<compile_context>
chip_gen: v5e
topology: v5e:2x2
jax: 0.10.0
libtpu: 0.0.40
codegen_flags: <defaults>
</compile_context>

<pallas_src>
import functools

import jax
import jax.numpy as jnp
from jax import lax
from jax.experimental import pallas as pl
from jax.experimental.pallas import tpu as pltpu


def _ista_kernel(y_ref, a_ref, o_ref, *, num_iterations, learning_rate, lambda_reg):
    """Full ISTA loop in-kernel.

    y_ref : (TB, M)  measurements for this batch tile
    a_ref : (M, N)   forward operator A (grid-invariant block)
    o_ref : (TB, N)  reconstructed x for this batch tile
    """
    y = y_ref[...].astype(jnp.float32)      # (TB, M)
    a = a_ref[...].astype(jnp.float32)      # (M, N)

    threshold = jnp.float32(learning_rate * lambda_reg)
    lr = jnp.float32(learning_rate)

    tb = y_ref.shape[0]
    n = a_ref.shape[1]

    def body(_, x):
        # residual = forward(x) - y == x @ A.T - y  (transposed-RHS contraction,
        # consumed natively by the MXU -- no XLU transpose, no At input).
        ax = lax.dot_general(
            x, a,
            dimension_numbers=(((1,), (1,)), ((), ())),
            preferred_element_type=jnp.float32,
        )                                                         # (TB, M)
        residual = ax - y
        # grad = adjoint(residual) == residual @ A
        grad = jnp.dot(residual, a, preferred_element_type=jnp.float32)  # (TB, N)
        x_gu = x - lr * grad
        # soft threshold (real branch): sign(x)*relu(|x|-t) == x - clip(x, -t, t)
        return x_gu - jnp.clip(x_gu, -threshold, threshold)

    # x_recon starts at zeros (the adjoint "initial guess" in the PyTorch module is
    # computed but unused -- only its shape matters). Iterate carried in vregs.
    x0 = jnp.zeros((tb, n), jnp.float32)
    x_final = lax.fori_loop(0, num_iterations, body, x0, unroll=True)
    o_ref[...] = x_final.astype(o_ref.dtype)


def l1_reconstruction(y_kspace, A, *, num_iterations=10,
                      learning_rate=0.1, lambda_reg=0.01):
    """JAX wrapper: dense-matrix LinearOperator + in-kernel ISTA."""
    B, M = y_kspace.shape
    M2, N = A.shape
    assert M == M2

    # Batch tile: shards independent recon rows across the grid (parallel axis ->
    # megacore on v7x). TB must be a multiple of 8 or equal to B.
    TB = B if B <= 128 else 128
    assert B % TB == 0, "batch must be divisible by the batch tile"
    grid = (B // TB,)

    kernel = functools.partial(
        _ista_kernel,
        num_iterations=num_iterations,
        learning_rate=learning_rate,
        lambda_reg=lambda_reg,
    )

    return pl.pallas_call(
        kernel,
        out_shape=jax.ShapeDtypeStruct((B, N), jnp.float32),
        grid=grid,
        in_specs=[
            pl.BlockSpec((TB, M), lambda i: (i, 0)),   # y: tiled over batch
            pl.BlockSpec((M, N), lambda i: (0, 0)),    # A: grid-invariant, VMEM-resident
        ],
        out_specs=pl.BlockSpec((TB, N), lambda i: (i, 0)),
        compiler_params=pltpu.CompilerParams(
            dimension_semantics=("parallel",)),
    )(y_kspace, A)


def _reference(y, A, *, num_iterations=10, learning_rate=0.1, lambda_reg=0.01):
    """Plain-JAX reference mirroring the PyTorch module."""
    x = jnp.zeros((y.shape[0], A.shape[1]), jnp.float32)
    thr = learning_rate * lambda_reg
    for _ in range(num_iterations):
        residual = x @ A.T - y
        grad = residual @ A
        xg = x - learning_rate * grad
        x = jnp.sign(xg) * jnp.maximum(jnp.abs(xg) - thr, 0.0)
    return x


if __name__ == "__main__":
    key = jax.random.PRNGKey(0)
    k_a, k_y = jax.random.split(key)

    B, M, N = 8, 128, 256  # batch, k-space measurements, flattened image size
    # Deterministic synthetic "linear operator" (e.g. undersampled encoding matrix).
    A = jax.random.normal(k_a, (M, N), dtype=jnp.float32) / jnp.sqrt(jnp.float32(N))
    y = jax.random.normal(k_y, (B, M), dtype=jnp.float32)

    x_recon = l1_reconstruction(y, A, num_iterations=10,
                                learning_rate=0.1, lambda_reg=0.01)
    x_recon = jax.block_until_ready(x_recon)

    x_ref = _reference(y, A, num_iterations=10, learning_rate=0.1, lambda_reg=0.01)
    assert x_recon.shape == (B, N)
    assert jnp.allclose(x_recon, x_ref, atol=1e-4, rtol=1e-4)

    print("KERNEL_OK")
</pallas_src>

<mosaic_0001>
module attributes {stable_mosaic.version = 11 : i64} {
  func.func @_ista_kernel(%arg0: i32, %arg1: memref<8x128xf32, #tpu.memory_space<vmem>>, %arg2: memref<128x256xf32, #tpu.memory_space<vmem>>, %arg3: memref<8x256xf32, #tpu.memory_space<vmem>>) attributes {dimension_semantics = [#tpu.dimension_semantics<parallel>], iteration_bounds = array<i64: 1>, scalar_prefetch = 0 : i64, scratch_operands = 0 : i64, tpu.core_type = #tpu.core_type<tc>, window_params = [{transform_indices = @transform_0, window_bounds = array<i64: 8, 128>}, {pipeline_mode = #tpu.pipeline_mode<synchronous>, transform_indices = @transform_1, window_bounds = array<i64: 128, 256>}, {transform_indices = @transform_2, window_bounds = array<i64: 8, 256>}]} {
    %c0 = arith.constant 0 : index
    %c0_0 = arith.constant 0 : index
    %0 = vector.load %arg1[%c0, %c0_0] : memref<8x128xf32, #tpu.memory_space<vmem>>, vector<8x128xf32>
    %c0_1 = arith.constant 0 : index
    %c0_2 = arith.constant 0 : index
    %1 = vector.load %arg2[%c0_1, %c0_2] : memref<128x256xf32, #tpu.memory_space<vmem>>, vector<128x256xf32>
    %cst = arith.constant 0.000000e+00 : f32
    %2 = vector.broadcast %cst : f32 to vector<8x256xf32>
    %cst_3 = arith.constant 1.000000e-01 : f32
    %cst_4 = arith.constant 1.000000e-03 : f32
    %c0_i32 = arith.constant 0 : i32
    %cst_5 = arith.constant dense<0.000000e+00> : vector<8x128xf32>
    %3 = tpu.matmul %2, %1, %cst_5 {dimension_numbers = #tpu.dot_dimension_numbers<[1], [1], [0], [0], [0, 0, 1, 0], [], []>} : vector<8x256xf32>, vector<128x256xf32>, vector<8x128xf32> -> vector<8x128xf32>
    %4 = arith.subf %3, %0 : vector<8x128xf32>
    %cst_6 = arith.constant dense<0.000000e+00> : vector<8x256xf32>
    %5 = tpu.matmul %4, %1, %cst_6 {dimension_numbers = #tpu.dot_dimension_numbers<[1], [0], [0], [1], [0, 0, 1, 1], [], []>} : vector<8x128xf32>, vector<128x256xf32>, vector<8x256xf32> -> vector<8x256xf32>
    %6 = vector.broadcast %cst_3 : f32 to vector<8x256xf32>
    %7 = arith.mulf %6, %5 : vector<8x256xf32>
    %8 = arith.subf %2, %7 : vector<8x256xf32>
    %cst_7 = arith.constant 0.000000e+00 : f32
    %9 = arith.subf %cst_7, %cst_4 : f32
    %10 = vector.broadcast %9 : f32 to vector<8x256xf32>
    %11 = arith.maximumf %10, %8 : vector<8x256xf32>
    %12 = vector.broadcast %cst_4 : f32 to vector<8x256xf32>
    %13 = arith.minimumf %12, %11 : vector<8x256xf32>
    %14 = arith.subf %8, %13 : vector<8x256xf32>
    %c1_i32 = arith.constant 1 : i32
    %cst_8 = arith.constant dense<0.000000e+00> : vector<8x128xf32>
    %15 = tpu.matmul %14, %1, %cst_8 {dimension_numbers = #tpu.dot_dimension_numbers<[1], [1], [0], [0], [0, 0, 1, 0], [], []>} : vector<8x256xf32>, vector<128x256xf32>, vector<8x128xf32> -> vector<8x128xf32>
    %16 = arith.subf %15, %0 : vector<8x128xf32>
    %cst_9 = arith.constant dense<0.000000e+00> : vector<8x256xf32>
    %17 = tpu.matmul %16, %1, %cst_9 {dimension_numbers = #tpu.dot_dimension_numbers<[1], [0], [0], [1], [0, 0, 1, 1], [], []>} : vector<8x128xf32>, vector<128x256xf32>, vector<8x256xf32> -> vector<8x256xf32>
    %18 = vector.broadcast %cst_3 : f32 to vector<8x256xf32>
    %19 = arith.mulf %18, %17 : vector<8x256xf32>
    %20 = arith.subf %14, %19 : vector<8x256xf32>
    %cst_10 = arith.constant 0.000000e+00 : f32
    %21 = arith.subf %cst_10, %cst_4 : f32
    %22 = vector.broadcast %21 : f32 to vector<8x256xf32>
    %23 = arith.maximumf %22, %20 : vector<8x256xf32>
    %24 = vector.broadcast %cst_4 : f32 to vector<8x256xf32>
    %25 = arith.minimumf %24, %23 : vector<8x256xf32>
    %26 = arith.subf %20, %25 : vector<8x256xf32>
    %c2_i32 = arith.constant 2 : i32
    %cst_11 = arith.constant dense<0.000000e+00> : vector<8x128xf32>
    %27 = tpu.matmul %26, %1, %cst_11 {dimension_numbers = #tpu.dot_dimension_numbers<[1], [1], [0], [0], [0, 0, 1, 0], [], []>} : vector<8x256xf32>, vector<128x256xf32>, vector<8x128xf32> -> vector<8x128xf32>
    %28 = arith.subf %27, %0 : vector<8x128xf32>
    %cst_12 = arith.constant dense<0.000000e+00> : vector<8x256xf32>
    %29 = tpu.matmul %28, %1, %cst_12 {dimension_numbers = #tpu.dot_dimension_numbers<[1], [0], [0], [1], [0, 0, 1, 1], [], []>} : vector<8x128xf32>, vector<128x256xf32>, vector<8x256xf32> -> vector<8x256xf32>
    %30 = vector.broadcast %cst_3 : f32 to vector<8x256xf32>
    %31 = arith.mulf %30, %29 : vector<8x256xf32>
    %32 = arith.subf %26, %31 : vector<8x256xf32>
    %cst_13 = arith.constant 0.000000e+00 : f32
    %33 = arith.subf %cst_13, %cst_4 : f32
    %34 = vector.broadcast %33 : f32 to vector<8x256xf32>
    %35 = arith.maximumf %34, %32 : vector<8x256xf32>
    %36 = vector.broadcast %cst_4 : f32 to vector<8x256xf32>
    %37 = arith.minimumf %36, %35 : vector<8x256xf32>
    %38 = arith.subf %32, %37 : vector<8x256xf32>
    %c3_i32 = arith.constant 3 : i32
    %cst_14 = arith.constant dense<0.000000e+00> : vector<8x128xf32>
    %39 = tpu.matmul %38, %1, %cst_14 {dimension_numbers = #tpu.dot_dimension_numbers<[1], [1], [0], [0], [0, 0, 1, 0], [], []>} : vector<8x256xf32>, vector<128x256xf32>, vector<8x128xf32> -> vector<8x128xf32>
    %40 = arith.subf %39, %0 : vector<8x128xf32>
    %cst_15 = arith.constant dense<0.000000e+00> : vector<8x256xf32>
    %41 = tpu.matmul %40, %1, %cst_15 {dimension_numbers = #tpu.dot_dimension_numbers<[1], [0], [0], [1], [0, 0, 1, 1], [], []>} : vector<8x128xf32>, vector<128x256xf32>, vector<8x256xf32> -> vector<8x256xf32>
    %42 = vector.broadcast %cst_3 : f32 to vector<8x256xf32>
    %43 = arith.mulf %42, %41 : vector<8x256xf32>
    %44 = arith.subf %38, %43 : vector<8x256xf32>
    %cst_16 = arith.constant 0.000000e+00 : f32
    %45 = arith.subf %cst_16, %cst_4 : f32
    %46 = vector.broadcast %45 : f32 to vector<8x256xf32>
    %47 = arith.maximumf %46, %44 : vector<8x256xf32>
    %48 = vector.broadcast %cst_4 : f32 to vector<8x256xf32>
    %49 = arith.minimumf %48, %47 : vector<8x256xf32>
    %50 = arith.subf %44, %49 : vector<8x256xf32>
    %c4_i32 = arith.constant 4 : i32
    %cst_17 = arith.constant dense<0.000000e+00> : vector<8x128xf32>
    %51 = tpu.matmul %50, %1, %cst_17 {dimension_numbers = #tpu.dot_dimension_numbers<[1], [1], [0], [0], [0, 0, 1, 0], [], []>} : vector<8x256xf32>, vector<128x256xf32>, vector<8x128xf32> -> vector<8x128xf32>
    %52 = arith.subf %51, %0 : vector<8x128xf32>
    %cst_18 = arith.constant dense<0.000000e+00> : vector<8x256xf32>
    %53 = tpu.matmul %52, %1, %cst_18 {dimension_numbers = #tpu.dot_dimension_numbers<[1], [0], [0], [1], [0, 0, 1, 1], [], []>} : vector<8x128xf32>, vector<128x256xf32>, vector<8x256xf32> -> vector<8x256xf32>
    %54 = vector.broadcast %cst_3 : f32 to vector<8x256xf32>
    %55 = arith.mulf %54, %53 : vector<8x256xf32>
    %56 = arith.subf %50, %55 : vector<8x256xf32>
    %cst_19 = arith.constant 0.000000e+00 : f32
    %57 = arith.subf %cst_19, %cst_4 : f32
    %58 = vector.broadcast %57 : f32 to vector<8x256xf32>
    %59 = arith.maximumf %58, %56 : vector<8x256xf32>
    %60 = vector.broadcast %cst_4 : f32 to vector<8x256xf32>
    %61 = arith.minimumf %60, %59 : vector<8x256xf32>
    %62 = arith.subf %56, %61 : vector<8x256xf32>
    %c5_i32 = arith.constant 5 : i32
    %cst_20 = arith.constant dense<0.000000e+00> : vector<8x128xf32>
    %63 = tpu.matmul %62, %1, %cst_20 {dimension_numbers = #tpu.dot_dimension_numbers<[1], [1], [0], [0], [0, 0, 1, 0], [], []>} : vector<8x256xf32>, vector<128x256xf32>, vector<8x128xf32> -> vector<8x128xf32>
    %64 = arith.subf %63, %0 : vector<8x128xf32>
    %cst_21 = arith.constant dense<0.000000e+00> : vector<8x256xf32>
    %65 = tpu.matmul %64, %1, %cst_21 {dimension_numbers = #tpu.dot_dimension_numbers<[1], [0], [0], [1], [0, 0, 1, 1], [], []>} : vector<8x128xf32>, vector<128x256xf32>, vector<8x256xf32> -> vector<8x256xf32>
    %66 = vector.broadcast %cst_3 : f32 to vector<8x256xf32>
    %67 = arith.mulf %66, %65 : vector<8x256xf32>
    %68 = arith.subf %62, %67 : vector<8x256xf32>
    %cst_22 = arith.constant 0.000000e+00 : f32
    %69 = arith.subf %cst_22, %cst_4 : f32
    %70 = vector.broadcast %69 : f32 to vector<8x256xf32>
    %71 = arith.maximumf %70, %68 : vector<8x256xf32>
    %72 = vector.broadcast %cst_4 : f32 to vector<8x256xf32>
    %73 = arith.minimumf %72, %71 : vector<8x256xf32>
    %74 = arith.subf %68, %73 : vector<8x256xf32>
    %c6_i32 = arith.constant 6 : i32
    %cst_23 = arith.constant dense<0.000000e+00> : vector<8x128xf32>
    %75 = tpu.matmul %74, %1, %cst_23 {dimension_numbers = #tpu.dot_dimension_numbers<[1], [1], [0], [0], [0, 0, 1, 0], [], []>} : vector<8x256xf32>, vector<128x256xf32>, vector<8x128xf32> -> vector<8x128xf32>
    %76 = arith.subf %75, %0 : vector<8x128xf32>
    %cst_24 = arith.constant dense<0.000000e+00> : vector<8x256xf32>
    %77 = tpu.matmul %76, %1, %cst_24 {dimension_numbers = #tpu.dot_dimension_numbers<[1], [0], [0], [1], [0, 0, 1, 1], [], []>} : vector<8x128xf32>, vector<128x256xf32>, vector<8x256xf32> -> vector<8x256xf32>
    %78 = vector.broadcast %cst_3 : f32 to vector<8x256xf32>
    %79 = arith.mulf %78, %77 : vector<8x256xf32>
    %80 = arith.subf %74, %79 : vector<8x256xf32>
    %cst_25 = arith.constant 0.000000e+00 : f32
    %81 = arith.subf %cst_25, %cst_4 : f32
    %82 = vector.broadcast %81 : f32 to vector<8x256xf32>
    %83 = arith.maximumf %82, %80 : vector<8x256xf32>
    %84 = vector.broadcast %cst_4 : f32 to vector<8x256xf32>
    %85 = arith.minimumf %84, %83 : vector<8x256xf32>
    %86 = arith.subf %80, %85 : vector<8x256xf32>
    %c7_i32 = arith.constant 7 : i32
    %cst_26 = arith.constant dense<0.000000e+00> : vector<8x128xf32>
    %87 = tpu.matmul %86, %1, %cst_26 {dimension_numbers = #tpu.dot_dimension_numbers<[1], [1], [0], [0], [0, 0, 1, 0], [], []>} : vector<8x256xf32>, vector<128x256xf32>, vector<8x128xf32> -> vector<8x128xf32>
    %88 = arith.subf %87, %0 : vector<8x128xf32>
    %cst_27 = arith.constant dense<0.000000e+00> : vector<8x256xf32>
    %89 = tpu.matmul %88, %1, %cst_27 {dimension_numbers = #tpu.dot_dimension_numbers<[1], [0], [0], [1], [0, 0, 1, 1], [], []>} : vector<8x128xf32>, vector<128x256xf32>, vector<8x256xf32> -> vector<8x256xf32>
    %90 = vector.broadcast %cst_3 : f32 to vector<8x256xf32>
    %91 = arith.mulf %90, %89 : vector<8x256xf32>
    %92 = arith.subf %86, %91 : vector<8x256xf32>
    %cst_28 = arith.constant 0.000000e+00 : f32
    %93 = arith.subf %cst_28, %cst_4 : f32
    %94 = vector.broadcast %93 : f32 to vector<8x256xf32>
    %95 = arith.maximumf %94, %92 : vector<8x256xf32>
    %96 = vector.broadcast %cst_4 : f32 to vector<8x256xf32>
    %97 = arith.minimumf %96, %95 : vector<8x256xf32>
    %98 = arith.subf %92, %97 : vector<8x256xf32>
    %c8_i32 = arith.constant 8 : i32
    %cst_29 = arith.constant dense<0.000000e+00> : vector<8x128xf32>
    %99 = tpu.matmul %98, %1, %cst_29 {dimension_numbers = #tpu.dot_dimension_numbers<[1], [1], [0], [0], [0, 0, 1, 0], [], []>} : vector<8x256xf32>, vector<128x256xf32>, vector<8x128xf32> -> vector<8x128xf32>
    %100 = arith.subf %99, %0 : vector<8x128xf32>
    %cst_30 = arith.constant dense<0.000000e+00> : vector<8x256xf32>
    %101 = tpu.matmul %100, %1, %cst_30 {dimension_numbers = #tpu.dot_dimension_numbers<[1], [0], [0], [1], [0, 0, 1, 1], [], []>} : vector<8x128xf32>, vector<128x256xf32>, vector<8x256xf32> -> vector<8x256xf32>
    %102 = vector.broadcast %cst_3 : f32 to vector<8x256xf32>
    %103 = arith.mulf %102, %101 : vector<8x256xf32>
    %104 = arith.subf %98, %103 : vector<8x256xf32>
    %cst_31 = arith.constant 0.000000e+00 : f32
    %105 = arith.subf %cst_31, %cst_4 : f32
    %106 = vector.broadcast %105 : f32 to vector<8x256xf32>
    %107 = arith.maximumf %106, %104 : vector<8x256xf32>
    %108 = vector.broadcast %cst_4 : f32 to vector<8x256xf32>
    %109 = arith.minimumf %108, %107 : vector<8x256xf32>
    %110 = arith.subf %104, %109 : vector<8x256xf32>
    %c9_i32 = arith.constant 9 : i32
    %cst_32 = arith.constant dense<0.000000e+00> : vector<8x128xf32>
    %111 = tpu.matmul %110, %1, %cst_32 {dimension_numbers = #tpu.dot_dimension_numbers<[1], [1], [0], [0], [0, 0, 1, 0], [], []>} : vector<8x256xf32>, vector<128x256xf32>, vector<8x128xf32> -> vector<8x128xf32>
    %112 = arith.subf %111, %0 : vector<8x128xf32>
    %cst_33 = arith.constant dense<0.000000e+00> : vector<8x256xf32>
    %113 = tpu.matmul %112, %1, %cst_33 {dimension_numbers = #tpu.dot_dimension_numbers<[1], [0], [0], [1], [0, 0, 1, 1], [], []>} : vector<8x128xf32>, vector<128x256xf32>, vector<8x256xf32> -> vector<8x256xf32>
    %114 = vector.broadcast %cst_3 : f32 to vector<8x256xf32>
    %115 = arith.mulf %114, %113 : vector<8x256xf32>
    %116 = arith.subf %110, %115 : vector<8x256xf32>
    %cst_34 = arith.constant 0.000000e+00 : f32
    %117 = arith.subf %cst_34, %cst_4 : f32
    %118 = vector.broadcast %117 : f32 to vector<8x256xf32>
    %119 = arith.maximumf %118, %116 : vector<8x256xf32>
    %120 = vector.broadcast %cst_4 : f32 to vector<8x256xf32>
    %121 = arith.minimumf %120, %119 : vector<8x256xf32>
    %122 = arith.subf %116, %121 : vector<8x256xf32>
    %c0_35 = arith.constant 0 : index
    %c0_36 = arith.constant 0 : index
    %123 = vector.load %arg3[%c0_35, %c0_36] : memref<8x256xf32, #tpu.memory_space<vmem>>, vector<8x256xf32>
    tpu.vector_store %arg3[%c0_35, %c0_36], %122 {strides = array<i32>} : memref<8x256xf32, #tpu.memory_space<vmem>>, vector<8x256xf32>,
    return
  }
  func.func @transform_0(%arg0: i32) -> (i32, i32) {
    %c0_i32 = arith.constant 0 : i32
    %c0_i32_0 = arith.constant 0 : i32
    return %arg0, %c0_i32 : i32, i32
  }
  func.func @transform_1(%arg0: i32) -> (i32, i32) {
    %c0_i32 = arith.constant 0 : i32
    %c0_i32_0 = arith.constant 0 : i32
    %c0_i32_1 = arith.constant 0 : i32
    return %c0_i32, %c0_i32_0 : i32, i32
  }
  func.func @transform_2(%arg0: i32) -> (i32, i32) {
    %c0_i32 = arith.constant 0 : i32
    %c0_i32_0 = arith.constant 0 : i32
    return %arg0, %c0_i32 : i32, i32
  }
}

</mosaic_0001>

<bundles_post_ra>
// kernel: tpu_custom_call.1
= control target key start
LH: loop header
LB: loop body
LE: loop exit
PB: predicated region body
PF: predicated region fallthrough
CT: control target
= control target key end

     0   :  { %7 = vsyncpa [#allocation3], 0  ;;  %s2010_s0 = inlined_call_operand.hbm [shape: f32[8,128], index: 0, kind: input, shape index: {}]   ;;  %s2011_s1 = inlined_call_operand.hbm [shape: f32[128,256], index: 1, kind: input, shape index: {}]   ;;  %s2012_s2 = inlined_call_operand.hbm [shape: f32[8,256], index: 2, kind: output, shape index: {}]  }
   0x1   :  { %8 = vsyncpa [#allocation6], 0 }
   0x2   :  { %9 = vsyncpa [#allocation4], 0  ;;  %s15_s11 = sshll.u32 %s2010_s0, 4  ;;  %s1142_s12 = smov [#allocation2]   ;;  %s16_s11 = int_to_ptr.hbm [resolvable:$true] %s15_s11 }
   0x3   :  { %s17_s13 = sshll.u32 %s1142_s12, 4  ;;  %s25_s16 = sshll.u32 %s2011_s1, 4  ;;  %s18_s13 = int_to_ptr.vmem [resolvable:$true] %s17_s13  ;;  %s26_s16 = int_to_ptr.hbm [resolvable:$true] %s25_s16 }
   0x4   :  { %20 = dma.hbm_to_vmem [thread:$0]  %s16_s11, 128, %s18_s13, [#allocation3]  }
   0x5   :  { %s1143_s17 = smov [#allocation5]   ;;  %s1144_s19 = smov 256  }
   0x6   :  { %s27_s18 = sshll.u32 %s1143_s17, 4  ;;  %s1145_s20 = smov 16   ;;  %s28_s18 = int_to_ptr.vmem [resolvable:$true] %s27_s18 }
   0x7   :  { %33 = dma.hbm_to_vmem [thread:$0]  %s26_s16, 4096, %s28_s18, [#allocation6], %s1144_s19, %s1144_s19, %s1145_s20  }
   0x8   :  { %1136 = dma.done.wait [#allocation3], 128  }
   0x9   :  { %1137 = vsyncadd [#allocation3], 4294967168 }
   0xa   :  { %1138 = dma.done.wait [#allocation6], 4096  }
   0xb   :  { %1139 = vsyncadd [#allocation6], 4294963200  ;;  %v1169_v0 = vld [vmem:[#allocation5 + $0xf0] sm:$0xff]  ;;  %v1171_v1 = vld [vmem:[#allocation5 + $0xf8] sm:$0xff]  ;;  %v1146_v32 = vmov 0.0   ;;  %s1147_s0 = smov [#allocation7]  }
   0xc   :  { %75 = vmatpush.xpose.msra.mxu0 %v1169_v0  ;;  %95 = vmatpush.xpose.msra.mxu1 %v1171_v1  ;;  %v1175_v2 = vld [vmem:[#allocation5 + $0xe0] sm:$0xff]  ;;  %v1177_v3 = vld [vmem:[#allocation5 + $0xe8] sm:$0xff]  ;;  %v1185_v4 = vld [vmem:[#allocation5 + $0xd0] sm:$0xff]  ;;  %s992_s1 = sshll.u32 %s1147_s0, 4  ;;  %s994_s23 = sshll.u32 %s2012_s2, 4  ;;  %s993_s1 = int_to_ptr.vmem [resolvable:$true] %s992_s1  ;;  %s995_s23 = int_to_ptr.hbm [resolvable:$true] %s994_s23 }
   0xd   :  { %116 = vmatpush.msra.mxu2 %v1169_v0  ;;  %136 = vmatpush.msra.mxu3 %v1171_v1  ;;  %v1187_v5 = vld [vmem:[#allocation5 + $0xd8] sm:$0xff]  ;;  %v1191_v6 = vld [vmem:[#allocation5 + $0xc0] sm:$0xff]  ;;  %v1193_v7 = vld [vmem:[#allocation5 + $0xc8] sm:$0xff] }
   0xe   :  { %v1199_v8 = vld [vmem:[#allocation5 + $0xb0] sm:$0xff]  ;;  %v1201_v9 = vld [vmem:[#allocation5 + $0xb8] sm:$0xff]  ;;  %v1205_v10 = vld [vmem:[#allocation5 + $0xa0] sm:$0xff] }
   0xf   :  { %117 = vmatpush.msra.mxu2 %v1175_v2  ;;  %137 = vmatpush.msra.mxu3 %v1177_v3  ;;  %v1207_v11 = vld [vmem:[#allocation5 + $0xa8] sm:$0xff]  ;;  %v1213_v12 = vld [vmem:[#allocation5 + $0x90] sm:$0xff]  ;;  %v1215_v13 = vld [vmem:[#allocation5 + $0x98] sm:$0xff] }
  0x10   :  { %76 = vmatpush.xpose.msra.mxu0 %v1175_v2  ;;  %96 = vmatpush.xpose.msra.mxu1 %v1177_v3  ;;  %v1219_v14 = vld [vmem:[#allocation5 + $0x80] sm:$0xff]  ;;  %v1221_v15 = vld [vmem:[#allocation5 + $0x88] sm:$0xff]  ;;  %v1227_v16 = vld [vmem:[#allocation5 + $0x70] sm:$0xff] }
  0x11   :  { %118 = vmatpush.msra.mxu2 %v1185_v4  ;;  %138 = vmatpush.msra.mxu3 %v1187_v5  ;;  %v1229_v17 = vld [vmem:[#allocation5 + $0x78] sm:$0xff]  ;;  %v1233_v18 = vld [vmem:[#allocation5 + $0x60] sm:$0xff]  ;;  %v1235_v19 = vld [vmem:[#allocation5 + $0x68] sm:$0xff] }
  0x12   :  { %v1241_v20 = vld [vmem:[#allocation5 + $0x50] sm:$0xff]  ;;  %v1243_v21 = vld [vmem:[#allocation5 + $0x58] sm:$0xff]  ;;  %v1247_v22 = vld [vmem:[#allocation5 + $0x40] sm:$0xff] }
  0x13   :  { %119 = vmatpush.msra.mxu2 %v1191_v6  ;;  %139 = vmatpush.msra.mxu3 %v1193_v7  ;;  %v1249_v23 = vld [vmem:[#allocation5 + $0x48] sm:$0xff]  ;;  %v1255_v24 = vld [vmem:[#allocation5 + $0x30] sm:$0xff]  ;;  %v1257_v25 = vld [vmem:[#allocation5 + $0x38] sm:$0xff] }
  0x14   :  { %77 = vmatpush.xpose.msra.mxu0 %v1185_v4  ;;  %97 = vmatpush.xpose.msra.mxu1 %v1187_v5  ;;  %v1261_v26 = vld [vmem:[#allocation5 + $0x20] sm:$0xff]  ;;  %v1263_v27 = vld [vmem:[#allocation5 + $0x28] sm:$0xff]  ;;  %v1269_v28 = vld [vmem:[#allocation5 + $0x10] sm:$0xff] }
  0x15   :  { %120 = vmatpush.msra.mxu2 %v1199_v8  ;;  %140 = vmatpush.msra.mxu3 %v1201_v9  ;;  %v1271_v29 = vld [vmem:[#allocation5 + $0x18] sm:$0xff]  ;;  %v1275_v30 = vld [vmem:[#allocation5] sm:$0xff]  ;;  %v1277_v31 = vld [vmem:[#allocation5 + $0x8] sm:$0xff] }
  0x16   :  { %v1393_v35 = vld [vmem:[#allocation2] sm:$0xff] }
  0x17   :  { %121 = vmatpush.msra.mxu2 %v1205_v10  ;;  %141 = vmatpush.msra.mxu3 %v1207_v11 }
  0x18   :  { %78 = vmatpush.xpose.msra.mxu0 %v1191_v6  ;;  %98 = vmatpush.xpose.msra.mxu1 %v1193_v7 }
  0x19   :  { %122 = vmatpush.msra.mxu2 %v1213_v12  ;;  %142 = vmatpush.msra.mxu3 %v1215_v13 }
  0x1b   :  { %123 = vmatpush.msra.mxu2 %v1219_v14  ;;  %143 = vmatpush.msra.mxu3 %v1221_v15 }
  0x1c   :  { %79 = vmatpush.xpose.msra.mxu0 %v1199_v8  ;;  %99 = vmatpush.xpose.msra.mxu1 %v1201_v9 }
  0x1d   :  { %124 = vmatpush.msra.mxu2 %v1227_v16  ;;  %144 = vmatpush.msra.mxu3 %v1229_v17 }
  0x1f   :  { %125 = vmatpush.msra.mxu2 %v1233_v18  ;;  %145 = vmatpush.msra.mxu3 %v1235_v19 }
  0x20   :  { %80 = vmatpush.xpose.msra.mxu0 %v1205_v10  ;;  %100 = vmatpush.xpose.msra.mxu1 %v1207_v11 }
  0x21   :  { %126 = vmatpush.msra.mxu2 %v1241_v20  ;;  %146 = vmatpush.msra.mxu3 %v1243_v21 }
  0x23   :  { %127 = vmatpush.msra.mxu2 %v1247_v22  ;;  %147 = vmatpush.msra.mxu3 %v1249_v23 }
  0x24   :  { %81 = vmatpush.xpose.msra.mxu0 %v1213_v12  ;;  %101 = vmatpush.xpose.msra.mxu1 %v1215_v13 }
  0x25   :  { %128 = vmatpush.msra.mxu2 %v1255_v24  ;;  %148 = vmatpush.msra.mxu3 %v1257_v25 }
  0x27   :  { %129 = vmatpush.msra.mxu2 %v1261_v26  ;;  %149 = vmatpush.msra.mxu3 %v1263_v27 }
  0x28   :  { %82 = vmatpush.xpose.msra.mxu0 %v1219_v14  ;;  %102 = vmatpush.xpose.msra.mxu1 %v1221_v15 }
  0x29   :  { %130 = vmatpush.msra.mxu2 %v1269_v28  ;;  %150 = vmatpush.msra.mxu3 %v1271_v29 }
  0x2b   :  { %131 = vmatpush.msra.mxu2 %v1275_v30  ;;  %151 = vmatpush.msra.mxu3 %v1277_v31 }
  0x2c   :  { %83 = vmatpush.xpose.msra.mxu0 %v1227_v16  ;;  %103 = vmatpush.xpose.msra.mxu1 %v1229_v17 }
  0x2d   :  { %166 = vmatpush.xpose.msrb.mxu2 %v1169_v0  ;;  %186 = vmatpush.xpose.msrb.mxu3 %v1171_v1 }
  0x30   :  { %84 = vmatpush.xpose.msra.mxu0 %v1233_v18  ;;  %104 = vmatpush.xpose.msra.mxu1 %v1235_v19 }
  0x31   :  { %167 = vmatpush.xpose.msrb.mxu2 %v1175_v2  ;;  %187 = vmatpush.xpose.msrb.mxu3 %v1177_v3 }
  0x34   :  { %85 = vmatpush.xpose.msra.mxu0 %v1241_v20  ;;  %105 = vmatpush.xpose.msra.mxu1 %v1243_v21 }
  0x35   :  { %168 = vmatpush.xpose.msrb.mxu2 %v1185_v4  ;;  %188 = vmatpush.xpose.msrb.mxu3 %v1187_v5 }
  0x38   :  { %86 = vmatpush.xpose.msra.mxu0 %v1247_v22  ;;  %106 = vmatpush.xpose.msra.mxu1 %v1249_v23 }
  0x39   :  { %169 = vmatpush.xpose.msrb.mxu2 %v1191_v6  ;;  %189 = vmatpush.xpose.msrb.mxu3 %v1193_v7 }
  0x3c   :  { %87 = vmatpush.xpose.msra.mxu0 %v1255_v24  ;;  %107 = vmatpush.xpose.msra.mxu1 %v1257_v25 }
  0x3d   :  { %170 = vmatpush.xpose.msrb.mxu2 %v1199_v8  ;;  %190 = vmatpush.xpose.msrb.mxu3 %v1201_v9 }
  0x40   :  { %88 = vmatpush.xpose.msra.mxu0 %v1261_v26  ;;  %108 = vmatpush.xpose.msra.mxu1 %v1263_v27 }
  0x41   :  { %171 = vmatpush.xpose.msrb.mxu2 %v1205_v10  ;;  %191 = vmatpush.xpose.msrb.mxu3 %v1207_v11 }
  0x44   :  { %89 = vmatpush.xpose.msra.mxu0 %v1269_v28  ;;  %109 = vmatpush.xpose.msra.mxu1 %v1271_v29 }
  0x45   :  { %172 = vmatpush.xpose.msrb.mxu2 %v1213_v12  ;;  %192 = vmatpush.xpose.msrb.mxu3 %v1215_v13 }
  0x48   :  { %90 = vmatpush.xpose.msra.mxu0 %v1275_v30  ;;  %110 = vmatpush.xpose.msra.mxu1 %v1277_v31 }
  0x49   :  { %173 = vmatpush.xpose.msrb.mxu2 %v1219_v14  ;;  %193 = vmatpush.xpose.msrb.mxu3 %v1221_v15 }
  0x4b   :  { %91 = vmatmul.f32.vlgmr.msra.gmra.mxu0 %v1146_v32  ;;  %111 = vmatmul.f32.vlgmr.msra.gmra.mxu1 %v1146_v32 }
  0x4c   :  { %207 = vmatpush.msrb.mxu0 %v1169_v0  ;;  %227 = vmatpush.msrb.mxu1 %v1171_v1 }
  0x4d   :  { %174 = vmatpush.xpose.msrb.mxu2 %v1227_v16  ;;  %194 = vmatpush.xpose.msrb.mxu3 %v1229_v17 }
  0x4e   :  { %208 = vmatpush.msrb.mxu0 %v1175_v2  ;;  %228 = vmatpush.msrb.mxu1 %v1177_v3 }
  0x50   :  { %209 = vmatpush.msrb.mxu0 %v1185_v4  ;;  %229 = vmatpush.msrb.mxu1 %v1187_v5 }
  0x51   :  { %175 = vmatpush.xpose.msrb.mxu2 %v1233_v18  ;;  %195 = vmatpush.xpose.msrb.mxu3 %v1235_v19 }
  0x52   :  { %210 = vmatpush.msrb.mxu0 %v1191_v6  ;;  %230 = vmatpush.msrb.mxu1 %v1193_v7 }
  0x54   :  { %211 = vmatpush.msrb.mxu0 %v1199_v8  ;;  %231 = vmatpush.msrb.mxu1 %v1201_v9 }
  0x55   :  { %176 = vmatpush.xpose.msrb.mxu2 %v1241_v20  ;;  %196 = vmatpush.xpose.msrb.mxu3 %v1243_v21 }
  0x56   :  { %212 = vmatpush.msrb.mxu0 %v1205_v10  ;;  %232 = vmatpush.msrb.mxu1 %v1207_v11 }
  0x58   :  { %213 = vmatpush.msrb.mxu0 %v1213_v12  ;;  %233 = vmatpush.msrb.mxu1 %v1215_v13 }
  0x59   :  { %177 = vmatpush.xpose.msrb.mxu2 %v1247_v22  ;;  %197 = vmatpush.xpose.msrb.mxu3 %v1249_v23 }
  0x5a   :  { %214 = vmatpush.msrb.mxu0 %v1219_v14  ;;  %234 = vmatpush.msrb.mxu1 %v1221_v15 }
  0x5c   :  { %215 = vmatpush.msrb.mxu0 %v1227_v16  ;;  %235 = vmatpush.msrb.mxu1 %v1229_v17 }
  0x5d   :  { %178 = vmatpush.xpose.msrb.mxu2 %v1255_v24  ;;  %198 = vmatpush.xpose.msrb.mxu3 %v1257_v25 }
  0x5e   :  { %216 = vmatpush.msrb.mxu0 %v1233_v18  ;;  %236 = vmatpush.msrb.mxu1 %v1235_v19 }
  0x60   :  { %217 = vmatpush.msrb.mxu0 %v1241_v20  ;;  %237 = vmatpush.msrb.mxu1 %v1243_v21 }
  0x61   :  { %179 = vmatpush.xpose.msrb.mxu2 %v1261_v26  ;;  %199 = vmatpush.xpose.msrb.mxu3 %v1263_v27 }
  0x62   :  { %218 = vmatpush.msrb.mxu0 %v1247_v22  ;;  %238 = vmatpush.msrb.mxu1 %v1249_v23 }
  0x64   :  { %219 = vmatpush.msrb.mxu0 %v1255_v24  ;;  %239 = vmatpush.msrb.mxu1 %v1257_v25 }
  0x65   :  { %180 = vmatpush.xpose.msrb.mxu2 %v1269_v28  ;;  %200 = vmatpush.xpose.msrb.mxu3 %v1271_v29 }
  0x66   :  { %220 = vmatpush.msrb.mxu0 %v1261_v26  ;;  %240 = vmatpush.msrb.mxu1 %v1263_v27 }
  0x68   :  { %221 = vmatpush.msrb.mxu0 %v1269_v28  ;;  %241 = vmatpush.msrb.mxu1 %v1271_v29 }
  0x69   :  { %181 = vmatpush.xpose.msrb.mxu2 %v1275_v30  ;;  %201 = vmatpush.xpose.msrb.mxu3 %v1277_v31 }
  0x6a   :  { %222 = vmatpush.msrb.mxu0 %v1275_v30  ;;  %242 = vmatpush.msrb.mxu1 %v1277_v31 }
  0x6c   :  { %257 = vmatpush.xpose.msra.mxu0 %v1169_v0  ;;  %277 = vmatpush.xpose.msra.mxu1 %v1171_v1 }
  0x70   :  { %258 = vmatpush.xpose.msra.mxu0 %v1175_v2  ;;  %278 = vmatpush.xpose.msra.mxu1 %v1177_v3 }
  0x74   :  { %259 = vmatpush.xpose.msra.mxu0 %v1185_v4  ;;  %279 = vmatpush.xpose.msra.mxu1 %v1187_v5 }
  0x78   :  { %260 = vmatpush.xpose.msra.mxu0 %v1191_v6  ;;  %280 = vmatpush.xpose.msra.mxu1 %v1193_v7 }
  0x7c   :  { %261 = vmatpush.xpose.msra.mxu0 %v1199_v8  ;;  %281 = vmatpush.xpose.msra.mxu1 %v1201_v9 }
  0x80   :  { %262 = vmatpush.xpose.msra.mxu0 %v1205_v10  ;;  %282 = vmatpush.xpose.msra.mxu1 %v1207_v11 }
  0x84   :  { %263 = vmatpush.xpose.msra.mxu0 %v1213_v12  ;;  %283 = vmatpush.xpose.msra.mxu1 %v1215_v13 }
  0x88   :  { %264 = vmatpush.xpose.msra.mxu0 %v1219_v14  ;;  %284 = vmatpush.xpose.msra.mxu1 %v1221_v15 }
  0x8c   :  { %265 = vmatpush.xpose.msra.mxu0 %v1227_v16  ;;  %285 = vmatpush.xpose.msra.mxu1 %v1229_v17 }
  0x90   :  { %266 = vmatpush.xpose.msra.mxu0 %v1233_v18  ;;  %286 = vmatpush.xpose.msra.mxu1 %v1235_v19 }
  0x94   :  { %267 = vmatpush.xpose.msra.mxu0 %v1241_v20  ;;  %287 = vmatpush.xpose.msra.mxu1 %v1243_v21 }
  0x98   :  { %268 = vmatpush.xpose.msra.mxu0 %v1247_v22  ;;  %288 = vmatpush.xpose.msra.mxu1 %v1249_v23 }
  0x9c   :  { %269 = vmatpush.xpose.msra.mxu0 %v1255_v24  ;;  %289 = vmatpush.xpose.msra.mxu1 %v1257_v25 }
  0xa0   :  { %270 = vmatpush.xpose.msra.mxu0 %v1261_v26  ;;  %290 = vmatpush.xpose.msra.mxu1 %v1263_v27 }
  0xa4   :  { %271 = vmatpush.xpose.msra.mxu0 %v1269_v28  ;;  %291 = vmatpush.xpose.msra.mxu1 %v1271_v29 }
  0xa8   :  { %272 = vmatpush.xpose.msra.mxu0 %v1275_v30  ;;  %292 = vmatpush.xpose.msra.mxu1 %v1277_v31 }
  0xc8   :  { %v92_v33 = vpop.f32.mrf.mxu0  ;;  %v112_v34 = vpop.f32.mrf.mxu1 }
  0xc9   :  { %v113_v36 = vadd.f32 %v112_v34, %v92_v33 }
  0xcb   :  { %v115_v37 = vsub.f32 %v113_v36, %v1393_v35 }
  0xcd   :  { %132 = vmatmul.f32.vlgmr.msra.gmra.mxu2 %v115_v37  ;;  %152 = vmatmul.f32.vlgmr.msra.gmra.mxu3 %v115_v37 }
  0xce   :  { %298 = vmatpush.msra.mxu2 %v1169_v0  ;;  %318 = vmatpush.msra.mxu3 %v1171_v1 }
  0xd0   :  { %299 = vmatpush.msra.mxu2 %v1175_v2  ;;  %319 = vmatpush.msra.mxu3 %v1177_v3 }
  0xd2   :  { %300 = vmatpush.msra.mxu2 %v1185_v4  ;;  %320 = vmatpush.msra.mxu3 %v1187_v5 }
  0xd4   :  { %301 = vmatpush.msra.mxu2 %v1191_v6  ;;  %321 = vmatpush.msra.mxu3 %v1193_v7 }
  0xd6   :  { %302 = vmatpush.msra.mxu2 %v1199_v8  ;;  %322 = vmatpush.msra.mxu3 %v1201_v9 }
  0xd8   :  { %303 = vmatpush.msra.mxu2 %v1205_v10  ;;  %323 = vmatpush.msra.mxu3 %v1207_v11 }
  0xda   :  { %304 = vmatpush.msra.mxu2 %v1213_v12  ;;  %324 = vmatpush.msra.mxu3 %v1215_v13 }
  0xdc   :  { %305 = vmatpush.msra.mxu2 %v1219_v14  ;;  %325 = vmatpush.msra.mxu3 %v1221_v15 }
  0xde   :  { %306 = vmatpush.msra.mxu2 %v1227_v16  ;;  %326 = vmatpush.msra.mxu3 %v1229_v17 }
  0xe0   :  { %307 = vmatpush.msra.mxu2 %v1233_v18  ;;  %327 = vmatpush.msra.mxu3 %v1235_v19 }
  0xe2   :  { %308 = vmatpush.msra.mxu2 %v1241_v20  ;;  %328 = vmatpush.msra.mxu3 %v1243_v21 }
  0xe4   :  { %309 = vmatpush.msra.mxu2 %v1247_v22  ;;  %329 = vmatpush.msra.mxu3 %v1249_v23 }
  0xe6   :  { %310 = vmatpush.msra.mxu2 %v1255_v24  ;;  %330 = vmatpush.msra.mxu3 %v1257_v25 }
  0xe8   :  { %311 = vmatpush.msra.mxu2 %v1261_v26  ;;  %331 = vmatpush.msra.mxu3 %v1263_v27 }
  0xea   :  { %312 = vmatpush.msra.mxu2 %v1269_v28  ;;  %332 = vmatpush.msra.mxu3 %v1271_v29 }
  0xec   :  { %313 = vmatpush.msra.mxu2 %v1275_v30  ;;  %333 = vmatpush.msra.mxu3 %v1277_v31 }
 0x150   :  { %v133_v38 = vpop.f32.mrf.mxu2  ;;  %v153_v39 = vpop.f32.mrf.mxu3 }
 0x151   :  { %v156_v40 = vmul.f32 0.1, %v133_v38  ;;  %v157_v41 = vmul.f32 0.1, %v153_v39 }
 0x153   :  { %v158_v42 = vsub.f32 0.0, %v156_v40  ;;  %v159_v43 = vsub.f32 0.0, %v157_v41 }
 0x155   :  { %v1005_v44 = vclamps-f32 %v158_v42, 0.001  ;;  %v1006_v45 = vclamps-f32 %v159_v43, 0.001 }
 0x157   :  { %v1428_v46 = vsub.f32 %v158_v42, %v1005_v44  ;;  %v1430_v47 = vsub.f32 %v159_v43, %v1006_v45 }
 0x159   :  { %182 = vmatmul.f32.vlgmr.msrb.gmra.mxu2 %v1428_v46  ;;  %202 = vmatmul.f32.vlgmr.msrb.gmra.mxu3 %v1430_v47 }
 0x15a   :  { %348 = vmatpush.xpose.msrb.mxu2 %v1169_v0  ;;  %368 = vmatpush.xpose.msrb.mxu3 %v1171_v1 }
 0x15e   :  { %349 = vmatpush.xpose.msrb.mxu2 %v1175_v2  ;;  %369 = vmatpush.xpose.msrb.mxu3 %v1177_v3 }
 0x162   :  { %350 = vmatpush.xpose.msrb.mxu2 %v1185_v4  ;;  %370 = vmatpush.xpose.msrb.mxu3 %v1187_v5 }
 0x166   :  { %351 = vmatpush.xpose.msrb.mxu2 %v1191_v6  ;;  %371 = vmatpush.xpose.msrb.mxu3 %v1193_v7 }
 0x16a   :  { %352 = vmatpush.xpose.msrb.mxu2 %v1199_v8  ;;  %372 = vmatpush.xpose.msrb.mxu3 %v1201_v9 }
 0x16e   :  { %353 = vmatpush.xpose.msrb.mxu2 %v1205_v10  ;;  %373 = vmatpush.xpose.msrb.mxu3 %v1207_v11 }
 0x172   :  { %354 = vmatpush.xpose.msrb.mxu2 %v1213_v12  ;;  %374 = vmatpush.xpose.msrb.mxu3 %v1215_v13 }
 0x176   :  { %355 = vmatpush.xpose.msrb.mxu2 %v1219_v14  ;;  %375 = vmatpush.xpose.msrb.mxu3 %v1221_v15 }
 0x17a   :  { %356 = vmatpush.xpose.msrb.mxu2 %v1227_v16  ;;  %376 = vmatpush.xpose.msrb.mxu3 %v1229_v17 }
 0x17e   :  { %357 = vmatpush.xpose.msrb.mxu2 %v1233_v18  ;;  %377 = vmatpush.xpose.msrb.mxu3 %v1235_v19 }
 0x182   :  { %358 = vmatpush.xpose.msrb.mxu2 %v1241_v20  ;;  %378 = vmatpush.xpose.msrb.mxu3 %v1243_v21 }
 0x186   :  { %359 = vmatpush.xpose.msrb.mxu2 %v1247_v22  ;;  %379 = vmatpush.xpose.msrb.mxu3 %v1249_v23 }
 0x18a   :  { %360 = vmatpush.xpose.msrb.mxu2 %v1255_v24  ;;  %380 = vmatpush.xpose.msrb.mxu3 %v1257_v25 }
 0x18e   :  { %361 = vmatpush.xpose.msrb.mxu2 %v1261_v26  ;;  %381 = vmatpush.xpose.msrb.mxu3 %v1263_v27 }
 0x192   :  { %362 = vmatpush.xpose.msrb.mxu2 %v1269_v28  ;;  %382 = vmatpush.xpose.msrb.mxu3 %v1271_v29 }
 0x196   :  { %363 = vmatpush.xpose.msrb.mxu2 %v1275_v30  ;;  %383 = vmatpush.xpose.msrb.mxu3 %v1277_v31 }
 0x1dc   :  { %v183_v48 = vpop.f32.mrf.mxu2  ;;  %v203_v49 = vpop.f32.mrf.mxu3 }
 0x1dd   :  { %v204_v50 = vadd.f32 %v203_v49, %v183_v48 }
 0x1df   :  { %v206_v51 = vsub.f32 %v204_v50, %v1393_v35 }
 0x1e1   :  { %223 = vmatmul.f32.vlgmr.msrb.gmra.mxu0 %v206_v51  ;;  %243 = vmatmul.f32.vlgmr.msrb.gmra.mxu1 %v206_v51 }
 0x1e2   :  { %389 = vmatpush.msrb.mxu0 %v1169_v0  ;;  %409 = vmatpush.msrb.mxu1 %v1171_v1 }
 0x1e4   :  { %390 = vmatpush.msrb.mxu0 %v1175_v2  ;;  %410 = vmatpush.msrb.mxu1 %v1177_v3 }
 0x1e6   :  { %391 = vmatpush.msrb.mxu0 %v1185_v4  ;;  %411 = vmatpush.msrb.mxu1 %v1187_v5 }
 0x1e8   :  { %392 = vmatpush.msrb.mxu0 %v1191_v6  ;;  %412 = vmatpush.msrb.mxu1 %v1193_v7 }
 0x1ea   :  { %393 = vmatpush.msrb.mxu0 %v1199_v8  ;;  %413 = vmatpush.msrb.mxu1 %v1201_v9 }
 0x1ec   :  { %394 = vmatpush.msrb.mxu0 %v1205_v10  ;;  %414 = vmatpush.msrb.mxu1 %v1207_v11 }
 0x1ee   :  { %395 = vmatpush.msrb.mxu0 %v1213_v12  ;;  %415 = vmatpush.msrb.mxu1 %v1215_v13 }
 0x1f0   :  { %396 = vmatpush.msrb.mxu0 %v1219_v14  ;;  %416 = vmatpush.msrb.mxu1 %v1221_v15 }
 0x1f2   :  { %397 = vmatpush.msrb.mxu0 %v1227_v16  ;;  %417 = vmatpush.msrb.mxu1 %v1229_v17 }
 0x1f4   :  { %398 = vmatpush.msrb.mxu0 %v1233_v18  ;;  %418 = vmatpush.msrb.mxu1 %v1235_v19 }
 0x1f6   :  { %399 = vmatpush.msrb.mxu0 %v1241_v20  ;;  %419 = vmatpush.msrb.mxu1 %v1243_v21 }
 0x1f8   :  { %400 = vmatpush.msrb.mxu0 %v1247_v22  ;;  %420 = vmatpush.msrb.mxu1 %v1249_v23 }
 0x1fa   :  { %401 = vmatpush.msrb.mxu0 %v1255_v24  ;;  %421 = vmatpush.msrb.mxu1 %v1257_v25 }
 0x1fc   :  { %402 = vmatpush.msrb.mxu0 %v1261_v26  ;;  %422 = vmatpush.msrb.mxu1 %v1263_v27 }
 0x1fe   :  { %403 = vmatpush.msrb.mxu0 %v1269_v28  ;;  %423 = vmatpush.msrb.mxu1 %v1271_v29 }
 0x200   :  { %404 = vmatpush.msrb.mxu0 %v1275_v30  ;;  %424 = vmatpush.msrb.mxu1 %v1277_v31 }
 0x25e   :  { %v224_v52 = vpop.f32.mrf.mxu0  ;;  %v244_v53 = vpop.f32.mrf.mxu1 }
 0x25f   :  { %v247_v54 = vmul.f32 0.1, %v224_v52  ;;  %v248_v55 = vmul.f32 0.1, %v244_v53 }
 0x261   :  { %v249_v56 = vsub.f32 %v1428_v46, %v247_v54  ;;  %v250_v57 = vsub.f32 %v1430_v47, %v248_v55 }
 0x263   :  { %v1007_v58 = vclamps-f32 %v249_v56, 0.001  ;;  %v1008_v59 = vclamps-f32 %v250_v57, 0.001 }
 0x265   :  { %v1501_v60 = vsub.f32 %v249_v56, %v1007_v58  ;;  %v1503_v61 = vsub.f32 %v250_v57, %v1008_v59  ;;  %v1710_v59 = vld [vmem:[#allocation5 + $0xb0] sm:$0xff] }
 0x267   :  { %273 = vmatmul.f32.vlgmr.msra.gmra.mxu0 %v1501_v60  ;;  %293 = vmatmul.f32.vlgmr.msra.gmra.mxu1 %v1503_v61 }
 0x268   :  { %439 = vmatpush.xpose.msra.mxu0 %v1169_v0  ;;  %459 = vmatpush.xpose.msra.mxu1 %v1171_v1 }
 0x26c   :  { %440 = vmatpush.xpose.msra.mxu0 %v1175_v2  ;;  %460 = vmatpush.xpose.msra.mxu1 %v1177_v3 }
 0x270   :  { %441 = vmatpush.xpose.msra.mxu0 %v1185_v4  ;;  %461 = vmatpush.xpose.msra.mxu1 %v1187_v5 }
 0x274   :  { %442 = vmatpush.xpose.msra.mxu0 %v1191_v6  ;;  %462 = vmatpush.xpose.msra.mxu1 %v1193_v7 }
 0x278   :  { %443 = vmatpush.xpose.msra.mxu0 %v1199_v8  ;;  %463 = vmatpush.xpose.msra.mxu1 %v1201_v9 }
 0x27c   :  { %444 = vmatpush.xpose.msra.mxu0 %v1205_v10  ;;  %464 = vmatpush.xpose.msra.mxu1 %v1207_v11 }
 0x280   :  { %445 = vmatpush.xpose.msra.mxu0 %v1213_v12  ;;  %465 = vmatpush.xpose.msra.mxu1 %v1215_v13 }
 0x284   :  { %446 = vmatpush.xpose.msra.mxu0 %v1219_v14  ;;  %466 = vmatpush.xpose.msra.mxu1 %v1221_v15 }
 0x288   :  { %447 = vmatpush.xpose.msra.mxu0 %v1227_v16  ;;  %467 = vmatpush.xpose.msra.mxu1 %v1229_v17 }
 0x28c   :  { %448 = vmatpush.xpose.msra.mxu0 %v1233_v18  ;;  %468 = vmatpush.xpose.msra.mxu1 %v1235_v19 }
 0x290   :  { %449 = vmatpush.xpose.msra.mxu0 %v1241_v20  ;;  %469 = vmatpush.xpose.msra.mxu1 %v1243_v21 }
 0x294   :  { %450 = vmatpush.xpose.msra.mxu0 %v1247_v22  ;;  %470 = vmatpush.xpose.msra.mxu1 %v1249_v23 }
 0x298   :  { %451 = vmatpush.xpose.msra.mxu0 %v1255_v24  ;;  %471 = vmatpush.xpose.msra.mxu1 %v1257_v25 }
 0x29c   :  { %452 = vmatpush.xpose.msra.mxu0 %v1261_v26  ;;  %472 = vmatpush.xpose.msra.mxu1 %v1263_v27 }
 0x2a0   :  { %453 = vmatpush.xpose.msra.mxu0 %v1269_v28  ;;  %473 = vmatpush.xpose.msra.mxu1 %v1271_v29 }
 0x2a4   :  { %454 = vmatpush.xpose.msra.mxu0 %v1275_v30  ;;  %474 = vmatpush.xpose.msra.mxu1 %v1277_v31 }
 0x2e4   :  { %v274_v62 = vpop.f32.mrf.mxu0  ;;  %v294_v63 = vpop.f32.mrf.mxu1 }
 0x2e5   :  { %v295_v32 = vadd.f32 %v294_v63, %v274_v62  ;;  %v1719_v62 = vld [vmem:[#allocation5 + $0xa8] sm:$0xff]  ;;  %v1792_v63 = vld [vmem:[#allocation5 + $0x40] sm:$0xff] }
 0x2e7   :  { %v297_v33 = vsub.f32 %v295_v32, %v1393_v35  ;;  %v1795_v32 = vld [vmem:[#allocation5 + $0x48] sm:$0xff] }
 0x2e9   :  { %314 = vmatmul.f32.vlgmr.msra.gmra.mxu2 %v297_v33  ;;  %334 = vmatmul.f32.vlgmr.msra.gmra.mxu3 %v297_v33  ;;  %v1798_v33 = vld [vmem:[#allocation5 + $0x30] sm:$0xff] }
 0x2ea   :  { %480 = vmatpush.msra.mxu2 %v1169_v0  ;;  %500 = vmatpush.msra.mxu3 %v1171_v1 }
 0x2ec   :  { %481 = vmatpush.msra.mxu2 %v1175_v2  ;;  %501 = vmatpush.msra.mxu3 %v1177_v3 }
 0x2ee   :  { %482 = vmatpush.msra.mxu2 %v1185_v4  ;;  %502 = vmatpush.msra.mxu3 %v1187_v5 }
 0x2f0   :  { %483 = vmatpush.msra.mxu2 %v1191_v6  ;;  %503 = vmatpush.msra.mxu3 %v1193_v7 }
 0x2f2   :  { %484 = vmatpush.msra.mxu2 %v1199_v8  ;;  %504 = vmatpush.msra.mxu3 %v1201_v9 }
 0x2f4   :  { %485 = vmatpush.msra.mxu2 %v1205_v10  ;;  %505 = vmatpush.msra.mxu3 %v1207_v11 }
 0x2f6   :  { %486 = vmatpush.msra.mxu2 %v1213_v12  ;;  %506 = vmatpush.msra.mxu3 %v1215_v13 }
 0x2f8   :  { %487 = vmatpush.msra.mxu2 %v1219_v14  ;;  %507 = vmatpush.msra.mxu3 %v1221_v15 }
 0x2fa   :  { %488 = vmatpush.msra.mxu2 %v1227_v16  ;;  %508 = vmatpush.msra.mxu3 %v1229_v17 }
 0x2fc   :  { %489 = vmatpush.msra.mxu2 %v1233_v18  ;;  %509 = vmatpush.msra.mxu3 %v1235_v19 }
 0x2fe   :  { %490 = vmatpush.msra.mxu2 %v1241_v20  ;;  %510 = vmatpush.msra.mxu3 %v1243_v21 }
 0x300   :  { %491 = vmatpush.msra.mxu2 %v1247_v22  ;;  %511 = vmatpush.msra.mxu3 %v1249_v23 }
 0x302   :  { %492 = vmatpush.msra.mxu2 %v1255_v24  ;;  %512 = vmatpush.msra.mxu3 %v1257_v25 }
 0x304   :  { %493 = vmatpush.msra.mxu2 %v1261_v26  ;;  %513 = vmatpush.msra.mxu3 %v1263_v27 }
 0x306   :  { %494 = vmatpush.msra.mxu2 %v1269_v28  ;;  %514 = vmatpush.msra.mxu3 %v1271_v29 }
 0x308   :  { %495 = vmatpush.msra.mxu2 %v1275_v30  ;;  %515 = vmatpush.msra.mxu3 %v1277_v31 }
 0x36c   :  { %v315_v34 = vpop.f32.mrf.mxu2  ;;  %v335_v36 = vpop.f32.mrf.mxu3 }
 0x36d   :  { %v338_v37 = vmul.f32 0.1, %v315_v34  ;;  %v339_v38 = vmul.f32 0.1, %v335_v36  ;;  %v1801_v34 = vld [vmem:[#allocation5 + $0x38] sm:$0xff]  ;;  %v1804_v36 = vld [vmem:[#allocation5 + $0x20] sm:$0xff] }
 0x36f   :  { %v340_v39 = vsub.f32 %v1501_v60, %v338_v37  ;;  %v341_v40 = vsub.f32 %v1503_v61, %v339_v38  ;;  %v1713_v60 = vld [vmem:[#allocation5 + $0xb8] sm:$0xff]  ;;  %v1716_v61 = vld [vmem:[#allocation5 + $0xa0] sm:$0xff]  ;;  %v1807_v37 = vld [vmem:[#allocation5 + $0x28] sm:$0xff] }
 0x370   :  { %v1810_v38 = vld [vmem:[#allocation5 + $0x10] sm:$0xff] }
 0x371   :  { %v1009_v41 = vclamps-f32 %v340_v39, 0.001  ;;  %v1010_v42 = vclamps-f32 %v341_v40, 0.001 }
 0x373   :  { %v1574_v43 = vsub.f32 %v340_v39, %v1009_v41  ;;  %v1576_v44 = vsub.f32 %v341_v40, %v1010_v42  ;;  %v1813_v39 = vld [vmem:[#allocation5 + $0x18] sm:$0xff]  ;;  %v1816_v40 = vld [vmem:[#allocation5] sm:$0xff]  ;;  %v1819_v41 = vld [vmem:[#allocation5 + $0x8] sm:$0xff] }
 0x375   :  { %364 = vmatmul.f32.vlgmr.msrb.gmra.mxu2 %v1574_v43  ;;  %384 = vmatmul.f32.vlgmr.msrb.gmra.mxu3 %v1576_v44 }
 0x376   :  { %530 = vmatpush.xpose.msrb.mxu2 %v1169_v0  ;;  %550 = vmatpush.xpose.msrb.mxu3 %v1171_v1 }
 0x37a   :  { %531 = vmatpush.xpose.msrb.mxu2 %v1175_v2  ;;  %551 = vmatpush.xpose.msrb.mxu3 %v1177_v3 }
 0x37e   :  { %532 = vmatpush.xpose.msrb.mxu2 %v1185_v4  ;;  %552 = vmatpush.xpose.msrb.mxu3 %v1187_v5 }
 0x382   :  { %533 = vmatpush.xpose.msrb.mxu2 %v1191_v6  ;;  %553 = vmatpush.xpose.msrb.mxu3 %v1193_v7 }
 0x386   :  { %534 = vmatpush.xpose.msrb.mxu2 %v1199_v8  ;;  %554 = vmatpush.xpose.msrb.mxu3 %v1201_v9 }
 0x38a   :  { %535 = vmatpush.xpose.msrb.mxu2 %v1205_v10  ;;  %555 = vmatpush.xpose.msrb.mxu3 %v1207_v11 }
 0x38e   :  { %536 = vmatpush.xpose.msrb.mxu2 %v1213_v12  ;;  %556 = vmatpush.xpose.msrb.mxu3 %v1215_v13 }
 0x392   :  { %537 = vmatpush.xpose.msrb.mxu2 %v1219_v14  ;;  %557 = vmatpush.xpose.msrb.mxu3 %v1221_v15 }
 0x396   :  { %538 = vmatpush.xpose.msrb.mxu2 %v1227_v16  ;;  %558 = vmatpush.xpose.msrb.mxu3 %v1229_v17 }
 0x39a   :  { %539 = vmatpush.xpose.msrb.mxu2 %v1233_v18  ;;  %559 = vmatpush.xpose.msrb.mxu3 %v1235_v19 }
 0x39e   :  { %540 = vmatpush.xpose.msrb.mxu2 %v1241_v20  ;;  %560 = vmatpush.xpose.msrb.mxu3 %v1243_v21 }
 0x3a2   :  { %541 = vmatpush.xpose.msrb.mxu2 %v1247_v22  ;;  %561 = vmatpush.xpose.msrb.mxu3 %v1249_v23 }
 0x3a6   :  { %542 = vmatpush.xpose.msrb.mxu2 %v1255_v24  ;;  %562 = vmatpush.xpose.msrb.mxu3 %v1257_v25 }
 0x3aa   :  { %543 = vmatpush.xpose.msrb.mxu2 %v1261_v26  ;;  %563 = vmatpush.xpose.msrb.mxu3 %v1263_v27 }
 0x3ae   :  { %544 = vmatpush.xpose.msrb.mxu2 %v1269_v28  ;;  %564 = vmatpush.xpose.msrb.mxu3 %v1271_v29 }
 0x3b2   :  { %545 = vmatpush.xpose.msrb.mxu2 %v1275_v30  ;;  %565 = vmatpush.xpose.msrb.mxu3 %v1277_v31 }
 0x3f8   :  { %v365_v45 = vpop.f32.mrf.mxu2  ;;  %v385_v46 = vpop.f32.mrf.mxu3 }
 0x3f9   :  { %v386_v47 = vadd.f32 %v385_v46, %v365_v45 }
 0x3fb   :  { %v388_v48 = vsub.f32 %v386_v47, %v1393_v35 }
 0x3fd   :  { %405 = vmatmul.f32.vlgmr.msrb.gmra.mxu0 %v388_v48  ;;  %425 = vmatmul.f32.vlgmr.msrb.gmra.mxu1 %v388_v48 }
 0x3fe   :  { %571 = vmatpush.msrb.mxu0 %v1169_v0  ;;  %591 = vmatpush.msrb.mxu1 %v1171_v1 }
 0x400   :  { %572 = vmatpush.msrb.mxu0 %v1175_v2  ;;  %592 = vmatpush.msrb.mxu1 %v1177_v3 }
 0x402   :  { %573 = vmatpush.msrb.mxu0 %v1185_v4  ;;  %593 = vmatpush.msrb.mxu1 %v1187_v5 }
 0x404   :  { %574 = vmatpush.msrb.mxu0 %v1191_v6  ;;  %594 = vmatpush.msrb.mxu1 %v1193_v7 }
 0x406   :  { %575 = vmatpush.msrb.mxu0 %v1199_v8  ;;  %595 = vmatpush.msrb.mxu1 %v1201_v9 }
 0x408   :  { %576 = vmatpush.msrb.mxu0 %v1205_v10  ;;  %596 = vmatpush.msrb.mxu1 %v1207_v11 }
 0x40a   :  { %577 = vmatpush.msrb.mxu0 %v1213_v12  ;;  %597 = vmatpush.msrb.mxu1 %v1215_v13 }
 0x40c   :  { %578 = vmatpush.msrb.mxu0 %v1219_v14  ;;  %598 = vmatpush.msrb.mxu1 %v1221_v15 }
 0x40e   :  { %579 = vmatpush.msrb.mxu0 %v1227_v16  ;;  %599 = vmatpush.msrb.mxu1 %v1229_v17 }
 0x410   :  { %580 = vmatpush.msrb.mxu0 %v1233_v18  ;;  %600 = vmatpush.msrb.mxu1 %v1235_v19 }
 0x412   :  { %581 = vmatpush.msrb.mxu0 %v1241_v20  ;;  %601 = vmatpush.msrb.mxu1 %v1243_v21 }
 0x414   :  { %582 = vmatpush.msrb.mxu0 %v1247_v22  ;;  %602 = vmatpush.msrb.mxu1 %v1249_v23 }
 0x416   :  { %583 = vmatpush.msrb.mxu0 %v1255_v24  ;;  %603 = vmatpush.msrb.mxu1 %v1257_v25 }
 0x418   :  { %584 = vmatpush.msrb.mxu0 %v1261_v26  ;;  %604 = vmatpush.msrb.mxu1 %v1263_v27 }
 0x41a   :  { %585 = vmatpush.msrb.mxu0 %v1269_v28  ;;  %605 = vmatpush.msrb.mxu1 %v1271_v29 }
 0x41c   :  { %586 = vmatpush.msrb.mxu0 %v1275_v30  ;;  %606 = vmatpush.msrb.mxu1 %v1277_v31 }
 0x47a   :  { %v406_v49 = vpop.f32.mrf.mxu0  ;;  %v426_v50 = vpop.f32.mrf.mxu1 }
 0x47b   :  { %v429_v51 = vmul.f32 0.1, %v406_v49  ;;  %v430_v52 = vmul.f32 0.1, %v426_v50 }
 0x47d   :  { %v431_v53 = vsub.f32 %v1574_v43, %v429_v51  ;;  %v432_v54 = vsub.f32 %v1576_v44, %v430_v52 }
 0x47f   :  { %v1011_v55 = vclamps-f32 %v431_v53, 0.001  ;;  %v1012_v56 = vclamps-f32 %v432_v54, 0.001 }
 0x481   :  { %v1647_v57 = vsub.f32 %v431_v53, %v1011_v55  ;;  %v1649_v58 = vsub.f32 %v432_v54, %v1012_v56 }
 0x483   :  { %455 = vmatmul.f32.vlgmr.msra.gmra.mxu0 %v1647_v57  ;;  %475 = vmatmul.f32.vlgmr.msra.gmra.mxu1 %v1649_v58 }
 0x484   :  { %621 = vmatpush.xpose.msra.mxu0 %v1169_v0  ;;  %641 = vmatpush.xpose.msra.mxu1 %v1171_v1 }
 0x488   :  { %622 = vmatpush.xpose.msra.mxu0 %v1175_v2  ;;  %642 = vmatpush.xpose.msra.mxu1 %v1177_v3 }
 0x48c   :  { %623 = vmatpush.xpose.msra.mxu0 %v1185_v4  ;;  %643 = vmatpush.xpose.msra.mxu1 %v1187_v5  ;;  %v1686_v4 = vld [vmem:[#allocation5 + $0xf0] sm:$0xff]  ;;  %v1689_v5 = vld [vmem:[#allocation5 + $0xf8] sm:$0xff] }
 0x490   :  { %624 = vmatpush.xpose.msra.mxu0 %v1191_v6  ;;  %644 = vmatpush.xpose.msra.mxu1 %v1193_v7  ;;  %v1692_v6 = vld [vmem:[#allocation5 + $0xe0] sm:$0xff]  ;;  %v1695_v7 = vld [vmem:[#allocation5 + $0xe8] sm:$0xff] }
 0x494   :  { %625 = vmatpush.xpose.msra.mxu0 %v1199_v8  ;;  %645 = vmatpush.xpose.msra.mxu1 %v1201_v9  ;;  %v1698_v8 = vld [vmem:[#allocation5 + $0xd0] sm:$0xff]  ;;  %v1701_v9 = vld [vmem:[#allocation5 + $0xd8] sm:$0xff] }
 0x498   :  { %626 = vmatpush.xpose.msra.mxu0 %v1205_v10  ;;  %646 = vmatpush.xpose.msra.mxu1 %v1207_v11  ;;  %v1704_v10 = vld [vmem:[#allocation5 + $0xc0] sm:$0xff]  ;;  %v1707_v11 = vld [vmem:[#allocation5 + $0xc8] sm:$0xff] }
 0x49c   :  { %627 = vmatpush.xpose.msra.mxu0 %v1213_v12  ;;  %647 = vmatpush.xpose.msra.mxu1 %v1215_v13 }
 0x4a0   :  { %628 = vmatpush.xpose.msra.mxu0 %v1219_v14  ;;  %648 = vmatpush.xpose.msra.mxu1 %v1221_v15 }
 0x4a4   :  { %629 = vmatpush.xpose.msra.mxu0 %v1227_v16  ;;  %649 = vmatpush.xpose.msra.mxu1 %v1229_v17 }
 0x4a8   :  { %630 = vmatpush.xpose.msra.mxu0 %v1233_v18  ;;  %650 = vmatpush.xpose.msra.mxu1 %v1235_v19 }
 0x4ac   :  { %631 = vmatpush.xpose.msra.mxu0 %v1241_v20  ;;  %651 = vmatpush.xpose.msra.mxu1 %v1243_v21 }
 0x4b0   :  { %632 = vmatpush.xpose.msra.mxu0 %v1247_v22  ;;  %652 = vmatpush.xpose.msra.mxu1 %v1249_v23 }
 0x4b4   :  { %633 = vmatpush.xpose.msra.mxu0 %v1255_v24  ;;  %653 = vmatpush.xpose.msra.mxu1 %v1257_v25 }
 0x4b8   :  { %634 = vmatpush.xpose.msra.mxu0 %v1261_v26  ;;  %654 = vmatpush.xpose.msra.mxu1 %v1263_v27 }
 0x4bc   :  { %635 = vmatpush.xpose.msra.mxu0 %v1269_v28  ;;  %655 = vmatpush.xpose.msra.mxu1 %v1271_v29 }
 0x4c0   :  { %636 = vmatpush.xpose.msra.mxu0 %v1275_v30  ;;  %656 = vmatpush.xpose.msra.mxu1 %v1277_v31 }
 0x500   :  { %v456_v0 = vpop.f32.mrf.mxu0  ;;  %v476_v1 = vpop.f32.mrf.mxu1 }
 0x501   :  { %v477_v2 = vadd.f32 %v476_v1, %v456_v0 }
 0x503   :  { %v479_v3 = vsub.f32 %v477_v2, %v1393_v35 }
 0x505   :  { %496 = vmatmul.f32.vlgmr.msra.gmra.mxu2 %v479_v3  ;;  %516 = vmatmul.f32.vlgmr.msra.gmra.mxu3 %v479_v3 }
 0x506   :  { %662 = vmatpush.msra.mxu2 %v1686_v4  ;;  %682 = vmatpush.msra.mxu3 %v1689_v5 }
 0x508   :  { %663 = vmatpush.msra.mxu2 %v1692_v6  ;;  %683 = vmatpush.msra.mxu3 %v1695_v7 }
 0x50a   :  { %664 = vmatpush.msra.mxu2 %v1698_v8  ;;  %684 = vmatpush.msra.mxu3 %v1701_v9 }
 0x50c   :  { %665 = vmatpush.msra.mxu2 %v1704_v10  ;;  %685 = vmatpush.msra.mxu3 %v1707_v11 }
 0x50e   :  { %666 = vmatpush.msra.mxu2 %v1710_v59  ;;  %686 = vmatpush.msra.mxu3 %v1713_v60 }
 0x510   :  { %667 = vmatpush.msra.mxu2 %v1716_v61  ;;  %687 = vmatpush.msra.mxu3 %v1719_v62 }
 0x512   :  { %668 = vmatpush.msra.mxu2 %v1213_v12  ;;  %688 = vmatpush.msra.mxu3 %v1215_v13 }
 0x514   :  { %669 = vmatpush.msra.mxu2 %v1219_v14  ;;  %689 = vmatpush.msra.mxu3 %v1221_v15 }
 0x516   :  { %670 = vmatpush.msra.mxu2 %v1227_v16  ;;  %690 = vmatpush.msra.mxu3 %v1229_v17 }
 0x518   :  { %671 = vmatpush.msra.mxu2 %v1233_v18  ;;  %691 = vmatpush.msra.mxu3 %v1235_v19 }
 0x51a   :  { %672 = vmatpush.msra.mxu2 %v1241_v20  ;;  %692 = vmatpush.msra.mxu3 %v1243_v21 }
 0x51c   :  { %673 = vmatpush.msra.mxu2 %v1247_v22  ;;  %693 = vmatpush.msra.mxu3 %v1249_v23  ;;  %v1762_v22 = vld [vmem:[#allocation5 + $0x90] sm:$0xff]  ;;  %v1765_v23 = vld [vmem:[#allocation5 + $0x98] sm:$0xff] }
 0x51e   :  { %674 = vmatpush.msra.mxu2 %v1255_v24  ;;  %694 = vmatpush.msra.mxu3 %v1257_v25  ;;  %v1768_v24 = vld [vmem:[#allocation5 + $0x80] sm:$0xff]  ;;  %v1771_v25 = vld [vmem:[#allocation5 + $0x88] sm:$0xff] }
 0x520   :  { %675 = vmatpush.msra.mxu2 %v1261_v26  ;;  %695 = vmatpush.msra.mxu3 %v1263_v27  ;;  %v1774_v26 = vld [vmem:[#allocation5 + $0x70] sm:$0xff]  ;;  %v1777_v27 = vld [vmem:[#allocation5 + $0x78] sm:$0xff] }
 0x522   :  { %676 = vmatpush.msra.mxu2 %v1269_v28  ;;  %696 = vmatpush.msra.mxu3 %v1271_v29  ;;  %v1780_v28 = vld [vmem:[#allocation5 + $0x60] sm:$0xff]  ;;  %v1783_v29 = vld [vmem:[#allocation5 + $0x68] sm:$0xff] }
 0x524   :  { %677 = vmatpush.msra.mxu2 %v1275_v30  ;;  %697 = vmatpush.msra.mxu3 %v1277_v31  ;;  %v1786_v30 = vld [vmem:[#allocation5 + $0x50] sm:$0xff]  ;;  %v1789_v31 = vld [vmem:[#allocation5 + $0x58] sm:$0xff] }
 0x588   :  { %v497_v12 = vpop.f32.mrf.mxu2  ;;  %v517_v13 = vpop.f32.mrf.mxu3 }
 0x589   :  { %v520_v14 = vmul.f32 0.1, %v497_v12  ;;  %v521_v15 = vmul.f32 0.1, %v517_v13 }
 0x58b   :  { %v522_v16 = vsub.f32 %v1647_v57, %v520_v14  ;;  %v523_v17 = vsub.f32 %v1649_v58, %v521_v15 }
 0x58d   :  { %v1013_v18 = vclamps-f32 %v522_v16, 0.001  ;;  %v1014_v19 = vclamps-f32 %v523_v17, 0.001 }
 0x58f   :  { %v1744_v20 = vsub.f32 %v522_v16, %v1013_v18  ;;  %v1746_v21 = vsub.f32 %v523_v17, %v1014_v19 }
 0x591   :  { %546 = vmatmul.f32.vlgmr.msrb.gmra.mxu2 %v1744_v20  ;;  %566 = vmatmul.f32.vlgmr.msrb.gmra.mxu3 %v1746_v21 }
 0x592   :  { %712 = vmatpush.xpose.msrb.mxu2 %v1686_v4  ;;  %732 = vmatpush.xpose.msrb.mxu3 %v1689_v5 }
 0x596   :  { %713 = vmatpush.xpose.msrb.mxu2 %v1692_v6  ;;  %733 = vmatpush.xpose.msrb.mxu3 %v1695_v7 }
 0x59a   :  { %714 = vmatpush.xpose.msrb.mxu2 %v1698_v8  ;;  %734 = vmatpush.xpose.msrb.mxu3 %v1701_v9 }
 0x59e   :  { %715 = vmatpush.xpose.msrb.mxu2 %v1704_v10  ;;  %735 = vmatpush.xpose.msrb.mxu3 %v1707_v11 }
 0x5a2   :  { %716 = vmatpush.xpose.msrb.mxu2 %v1710_v59  ;;  %736 = vmatpush.xpose.msrb.mxu3 %v1713_v60 }
 0x5a6   :  { %717 = vmatpush.xpose.msrb.mxu2 %v1716_v61  ;;  %737 = vmatpush.xpose.msrb.mxu3 %v1719_v62 }
 0x5aa   :  { %718 = vmatpush.xpose.msrb.mxu2 %v1762_v22  ;;  %738 = vmatpush.xpose.msrb.mxu3 %v1765_v23 }
 0x5ae   :  { %719 = vmatpush.xpose.msrb.mxu2 %v1768_v24  ;;  %739 = vmatpush.xpose.msrb.mxu3 %v1771_v25 }
 0x5b2   :  { %720 = vmatpush.xpose.msrb.mxu2 %v1774_v26  ;;  %740 = vmatpush.xpose.msrb.mxu3 %v1777_v27 }
 0x5b6   :  { %721 = vmatpush.xpose.msrb.mxu2 %v1780_v28  ;;  %741 = vmatpush.xpose.msrb.mxu3 %v1783_v29 }
 0x5ba   :  { %722 = vmatpush.xpose.msrb.mxu2 %v1786_v30  ;;  %742 = vmatpush.xpose.msrb.mxu3 %v1789_v31 }
 0x5be   :  { %723 = vmatpush.xpose.msrb.mxu2 %v1792_v63  ;;  %743 = vmatpush.xpose.msrb.mxu3 %v1795_v32 }
 0x5c2   :  { %724 = vmatpush.xpose.msrb.mxu2 %v1798_v33  ;;  %744 = vmatpush.xpose.msrb.mxu3 %v1801_v34 }
 0x5c6   :  { %725 = vmatpush.xpose.msrb.mxu2 %v1804_v36  ;;  %745 = vmatpush.xpose.msrb.mxu3 %v1807_v37 }
 0x5ca   :  { %726 = vmatpush.xpose.msrb.mxu2 %v1810_v38  ;;  %746 = vmatpush.xpose.msrb.mxu3 %v1813_v39 }
 0x5ce   :  { %727 = vmatpush.xpose.msrb.mxu2 %v1816_v40  ;;  %747 = vmatpush.xpose.msrb.mxu3 %v1819_v41 }
 0x614   :  { %v547_v42 = vpop.f32.mrf.mxu2  ;;  %v567_v43 = vpop.f32.mrf.mxu3 }
 0x615   :  { %v568_v44 = vadd.f32 %v567_v43, %v547_v42 }
 0x617   :  { %v570_v45 = vsub.f32 %v568_v44, %v1393_v35 }
 0x619   :  { %587 = vmatmul.f32.vlgmr.msrb.gmra.mxu0 %v570_v45  ;;  %607 = vmatmul.f32.vlgmr.msrb.gmra.mxu1 %v570_v45 }
 0x61a   :  { %753 = vmatpush.msrb.mxu0 %v1686_v4  ;;  %773 = vmatpush.msrb.mxu1 %v1689_v5 }
 0x61c   :  { %754 = vmatpush.msrb.mxu0 %v1692_v6  ;;  %774 = vmatpush.msrb.mxu1 %v1695_v7 }
 0x61e   :  { %755 = vmatpush.msrb.mxu0 %v1698_v8  ;;  %775 = vmatpush.msrb.mxu1 %v1701_v9 }
 0x620   :  { %756 = vmatpush.msrb.mxu0 %v1704_v10  ;;  %776 = vmatpush.msrb.mxu1 %v1707_v11 }
 0x622   :  { %757 = vmatpush.msrb.mxu0 %v1710_v59  ;;  %777 = vmatpush.msrb.mxu1 %v1713_v60 }
 0x624   :  { %758 = vmatpush.msrb.mxu0 %v1716_v61  ;;  %778 = vmatpush.msrb.mxu1 %v1719_v62 }
 0x626   :  { %759 = vmatpush.msrb.mxu0 %v1762_v22  ;;  %779 = vmatpush.msrb.mxu1 %v1765_v23 }
 0x628   :  { %760 = vmatpush.msrb.mxu0 %v1768_v24  ;;  %780 = vmatpush.msrb.mxu1 %v1771_v25 }
 0x62a   :  { %761 = vmatpush.msrb.mxu0 %v1774_v26  ;;  %781 = vmatpush.msrb.mxu1 %v1777_v27 }
 0x62c   :  { %762 = vmatpush.msrb.mxu0 %v1780_v28  ;;  %782 = vmatpush.msrb.mxu1 %v1783_v29 }
 0x62e   :  { %763 = vmatpush.msrb.mxu0 %v1786_v30  ;;  %783 = vmatpush.msrb.mxu1 %v1789_v31 }
 0x630   :  { %764 = vmatpush.msrb.mxu0 %v1792_v63  ;;  %784 = vmatpush.msrb.mxu1 %v1795_v32 }
 0x632   :  { %765 = vmatpush.msrb.mxu0 %v1798_v33  ;;  %785 = vmatpush.msrb.mxu1 %v1801_v34 }
 0x634   :  { %766 = vmatpush.msrb.mxu0 %v1804_v36  ;;  %786 = vmatpush.msrb.mxu1 %v1807_v37 }
 0x636   :  { %767 = vmatpush.msrb.mxu0 %v1810_v38  ;;  %787 = vmatpush.msrb.mxu1 %v1813_v39 }
 0x638   :  { %768 = vmatpush.msrb.mxu0 %v1816_v40  ;;  %788 = vmatpush.msrb.mxu1 %v1819_v41 }
 0x696   :  { %v588_v46 = vpop.f32.mrf.mxu0  ;;  %v608_v47 = vpop.f32.mrf.mxu1 }
 0x697   :  { %v611_v48 = vmul.f32 0.1, %v588_v46  ;;  %v612_v49 = vmul.f32 0.1, %v608_v47 }
 0x699   :  { %v613_v50 = vsub.f32 %v1744_v20, %v611_v48  ;;  %v614_v51 = vsub.f32 %v1746_v21, %v612_v49  ;;  %v1968_v21 = vld [vmem:[#allocation2] sm:$0xff] }
 0x69b   :  { %v1015_v52 = vclamps-f32 %v613_v50, 0.001  ;;  %v1016_v53 = vclamps-f32 %v614_v51, 0.001 }
 0x69d   :  { %v1857_v54 = vsub.f32 %v613_v50, %v1015_v52  ;;  %v1859_v55 = vsub.f32 %v614_v51, %v1016_v53 }
 0x69f   :  { %637 = vmatmul.f32.vlgmr.msra.gmra.mxu0 %v1857_v54  ;;  %657 = vmatmul.f32.vlgmr.msra.gmra.mxu1 %v1859_v55 }
 0x6a0   :  { %803 = vmatpush.xpose.msra.mxu0 %v1686_v4  ;;  %823 = vmatpush.xpose.msra.mxu1 %v1689_v5 }
 0x6a4   :  { %804 = vmatpush.xpose.msra.mxu0 %v1692_v6  ;;  %824 = vmatpush.xpose.msra.mxu1 %v1695_v7 }
 0x6a8   :  { %805 = vmatpush.xpose.msra.mxu0 %v1698_v8  ;;  %825 = vmatpush.xpose.msra.mxu1 %v1701_v9 }
 0x6ac   :  { %806 = vmatpush.xpose.msra.mxu0 %v1704_v10  ;;  %826 = vmatpush.xpose.msra.mxu1 %v1707_v11 }
 0x6b0   :  { %807 = vmatpush.xpose.msra.mxu0 %v1710_v59  ;;  %827 = vmatpush.xpose.msra.mxu1 %v1713_v60 }
 0x6b4   :  { %808 = vmatpush.xpose.msra.mxu0 %v1716_v61  ;;  %828 = vmatpush.xpose.msra.mxu1 %v1719_v62 }
 0x6b8   :  { %809 = vmatpush.xpose.msra.mxu0 %v1762_v22  ;;  %829 = vmatpush.xpose.msra.mxu1 %v1765_v23 }
 0x6bc   :  { %810 = vmatpush.xpose.msra.mxu0 %v1768_v24  ;;  %830 = vmatpush.xpose.msra.mxu1 %v1771_v25 }
 0x6c0   :  { %811 = vmatpush.xpose.msra.mxu0 %v1774_v26  ;;  %831 = vmatpush.xpose.msra.mxu1 %v1777_v27 }
 0x6c4   :  { %812 = vmatpush.xpose.msra.mxu0 %v1780_v28  ;;  %832 = vmatpush.xpose.msra.mxu1 %v1783_v29 }
 0x6c8   :  { %813 = vmatpush.xpose.msra.mxu0 %v1786_v30  ;;  %833 = vmatpush.xpose.msra.mxu1 %v1789_v31 }
 0x6cc   :  { %814 = vmatpush.xpose.msra.mxu0 %v1792_v63  ;;  %834 = vmatpush.xpose.msra.mxu1 %v1795_v32 }
 0x6d0   :  { %815 = vmatpush.xpose.msra.mxu0 %v1798_v33  ;;  %835 = vmatpush.xpose.msra.mxu1 %v1801_v34 }
 0x6d4   :  { %816 = vmatpush.xpose.msra.mxu0 %v1804_v36  ;;  %836 = vmatpush.xpose.msra.mxu1 %v1807_v37 }
 0x6d8   :  { %817 = vmatpush.xpose.msra.mxu0 %v1810_v38  ;;  %837 = vmatpush.xpose.msra.mxu1 %v1813_v39 }
 0x6dc   :  { %818 = vmatpush.xpose.msra.mxu0 %v1816_v40  ;;  %838 = vmatpush.xpose.msra.mxu1 %v1819_v41 }
 0x71c   :  { %v638_v56 = vpop.f32.mrf.mxu0  ;;  %v658_v57 = vpop.f32.mrf.mxu1 }
 0x71d   :  { %v659_v58 = vadd.f32 %v658_v57, %v638_v56 }
 0x71f   :  { %v661_v0 = vsub.f32 %v659_v58, %v1393_v35 }
 0x721   :  { %678 = vmatmul.f32.vlgmr.msra.gmra.mxu2 %v661_v0  ;;  %698 = vmatmul.f32.vlgmr.msra.gmra.mxu3 %v661_v0 }
 0x722   :  { %844 = vmatpush.msra.mxu2 %v1686_v4  ;;  %864 = vmatpush.msra.mxu3 %v1689_v5 }
 0x724   :  { %845 = vmatpush.msra.mxu2 %v1692_v6  ;;  %865 = vmatpush.msra.mxu3 %v1695_v7 }
 0x726   :  { %846 = vmatpush.msra.mxu2 %v1698_v8  ;;  %866 = vmatpush.msra.mxu3 %v1701_v9 }
 0x728   :  { %847 = vmatpush.msra.mxu2 %v1704_v10  ;;  %867 = vmatpush.msra.mxu3 %v1707_v11 }
 0x72a   :  { %848 = vmatpush.msra.mxu2 %v1710_v59  ;;  %868 = vmatpush.msra.mxu3 %v1713_v60 }
 0x72c   :  { %849 = vmatpush.msra.mxu2 %v1716_v61  ;;  %869 = vmatpush.msra.mxu3 %v1719_v62 }
 0x72e   :  { %850 = vmatpush.msra.mxu2 %v1762_v22  ;;  %870 = vmatpush.msra.mxu3 %v1765_v23 }
 0x730   :  { %851 = vmatpush.msra.mxu2 %v1768_v24  ;;  %871 = vmatpush.msra.mxu3 %v1771_v25 }
 0x732   :  { %852 = vmatpush.msra.mxu2 %v1774_v26  ;;  %872 = vmatpush.msra.mxu3 %v1777_v27 }
 0x734   :  { %853 = vmatpush.msra.mxu2 %v1780_v28  ;;  %873 = vmatpush.msra.mxu3 %v1783_v29 }
 0x736   :  { %854 = vmatpush.msra.mxu2 %v1786_v30  ;;  %874 = vmatpush.msra.mxu3 %v1789_v31 }
 0x738   :  { %855 = vmatpush.msra.mxu2 %v1792_v63  ;;  %875 = vmatpush.msra.mxu3 %v1795_v32 }
 0x73a   :  { %856 = vmatpush.msra.mxu2 %v1798_v33  ;;  %876 = vmatpush.msra.mxu3 %v1801_v34 }
 0x73c   :  { %857 = vmatpush.msra.mxu2 %v1804_v36  ;;  %877 = vmatpush.msra.mxu3 %v1807_v37 }
 0x73e   :  { %858 = vmatpush.msra.mxu2 %v1810_v38  ;;  %878 = vmatpush.msra.mxu3 %v1813_v39 }
 0x740   :  { %859 = vmatpush.msra.mxu2 %v1816_v40  ;;  %879 = vmatpush.msra.mxu3 %v1819_v41 }
 0x7a4   :  { %v679_v35 = vpop.f32.mrf.mxu2  ;;  %v699_v1 = vpop.f32.mrf.mxu3 }
 0x7a5   :  { %v702_v2 = vmul.f32 0.1, %v679_v35  ;;  %v703_v3 = vmul.f32 0.1, %v699_v1 }
 0x7a7   :  { %v704_v12 = vsub.f32 %v1857_v54, %v702_v2  ;;  %v705_v13 = vsub.f32 %v1859_v55, %v703_v3 }
 0x7a9   :  { %v1017_v14 = vclamps-f32 %v704_v12, 0.001  ;;  %v1018_v15 = vclamps-f32 %v705_v13, 0.001 }
 0x7ab   :  { %v1930_v16 = vsub.f32 %v704_v12, %v1017_v14  ;;  %v1932_v17 = vsub.f32 %v705_v13, %v1018_v15 }
 0x7ad   :  { %728 = vmatmul.f32.vlgmr.msrb.gmra.mxu2 %v1930_v16  ;;  %748 = vmatmul.f32.vlgmr.msrb.gmra.mxu3 %v1932_v17 }
 0x7ae   :  { %894 = vmatpush.xpose.msrb.mxu2 %v1686_v4  ;;  %914 = vmatpush.xpose.msrb.mxu3 %v1689_v5 }
 0x7b2   :  { %895 = vmatpush.xpose.msrb.mxu2 %v1692_v6  ;;  %915 = vmatpush.xpose.msrb.mxu3 %v1695_v7 }
 0x7b6   :  { %896 = vmatpush.xpose.msrb.mxu2 %v1698_v8  ;;  %916 = vmatpush.xpose.msrb.mxu3 %v1701_v9 }
 0x7ba   :  { %897 = vmatpush.xpose.msrb.mxu2 %v1704_v10  ;;  %917 = vmatpush.xpose.msrb.mxu3 %v1707_v11 }
 0x7be   :  { %898 = vmatpush.xpose.msrb.mxu2 %v1710_v59  ;;  %918 = vmatpush.xpose.msrb.mxu3 %v1713_v60 }
 0x7c2   :  { %899 = vmatpush.xpose.msrb.mxu2 %v1716_v61  ;;  %919 = vmatpush.xpose.msrb.mxu3 %v1719_v62 }
 0x7c6   :  { %900 = vmatpush.xpose.msrb.mxu2 %v1762_v22  ;;  %920 = vmatpush.xpose.msrb.mxu3 %v1765_v23 }
 0x7ca   :  { %901 = vmatpush.xpose.msrb.mxu2 %v1768_v24  ;;  %921 = vmatpush.xpose.msrb.mxu3 %v1771_v25 }
 0x7ce   :  { %902 = vmatpush.xpose.msrb.mxu2 %v1774_v26  ;;  %922 = vmatpush.xpose.msrb.mxu3 %v1777_v27 }
 0x7d2   :  { %903 = vmatpush.xpose.msrb.mxu2 %v1780_v28  ;;  %923 = vmatpush.xpose.msrb.mxu3 %v1783_v29 }
 0x7d6   :  { %904 = vmatpush.xpose.msrb.mxu2 %v1786_v30  ;;  %924 = vmatpush.xpose.msrb.mxu3 %v1789_v31 }
 0x7da   :  { %905 = vmatpush.xpose.msrb.mxu2 %v1792_v63  ;;  %925 = vmatpush.xpose.msrb.mxu3 %v1795_v32 }
 0x7de   :  { %906 = vmatpush.xpose.msrb.mxu2 %v1798_v33  ;;  %926 = vmatpush.xpose.msrb.mxu3 %v1801_v34 }
 0x7e2   :  { %907 = vmatpush.xpose.msrb.mxu2 %v1804_v36  ;;  %927 = vmatpush.xpose.msrb.mxu3 %v1807_v37 }
 0x7e6   :  { %908 = vmatpush.xpose.msrb.mxu2 %v1810_v38  ;;  %928 = vmatpush.xpose.msrb.mxu3 %v1813_v39 }
 0x7ea   :  { %909 = vmatpush.xpose.msrb.mxu2 %v1816_v40  ;;  %929 = vmatpush.xpose.msrb.mxu3 %v1819_v41 }
 0x830   :  { %v729_v18 = vpop.f32.mrf.mxu2  ;;  %v749_v19 = vpop.f32.mrf.mxu3 }
 0x831   :  { %v750_v20 = vadd.f32 %v749_v19, %v729_v18 }
 0x833   :  { %v752_v42 = vsub.f32 %v750_v20, %v1968_v21 }
 0x835   :  { %769 = vmatmul.f32.vlgmr.msrb.gmra.mxu0 %v752_v42  ;;  %789 = vmatmul.f32.vlgmr.msrb.gmra.mxu1 %v752_v42 }
 0x836   :  { %935 = vmatpush.msrb.mxu0 %v1686_v4  ;;  %955 = vmatpush.msrb.mxu1 %v1689_v5 }
 0x838   :  { %936 = vmatpush.msrb.mxu0 %v1692_v6  ;;  %956 = vmatpush.msrb.mxu1 %v1695_v7 }
 0x83a   :  { %937 = vmatpush.msrb.mxu0 %v1698_v8  ;;  %957 = vmatpush.msrb.mxu1 %v1701_v9 }
 0x83c   :  { %938 = vmatpush.msrb.mxu0 %v1704_v10  ;;  %958 = vmatpush.msrb.mxu1 %v1707_v11 }
 0x83e   :  { %939 = vmatpush.msrb.mxu0 %v1710_v59  ;;  %959 = vmatpush.msrb.mxu1 %v1713_v60 }
 0x840   :  { %940 = vmatpush.msrb.mxu0 %v1716_v61  ;;  %960 = vmatpush.msrb.mxu1 %v1719_v62 }
 0x842   :  { %941 = vmatpush.msrb.mxu0 %v1762_v22  ;;  %961 = vmatpush.msrb.mxu1 %v1765_v23 }
 0x844   :  { %942 = vmatpush.msrb.mxu0 %v1768_v24  ;;  %962 = vmatpush.msrb.mxu1 %v1771_v25 }
 0x846   :  { %943 = vmatpush.msrb.mxu0 %v1774_v26  ;;  %963 = vmatpush.msrb.mxu1 %v1777_v27 }
 0x848   :  { %944 = vmatpush.msrb.mxu0 %v1780_v28  ;;  %964 = vmatpush.msrb.mxu1 %v1783_v29 }
 0x84a   :  { %945 = vmatpush.msrb.mxu0 %v1786_v30  ;;  %965 = vmatpush.msrb.mxu1 %v1789_v31 }
 0x84c   :  { %946 = vmatpush.msrb.mxu0 %v1792_v63  ;;  %966 = vmatpush.msrb.mxu1 %v1795_v32 }
 0x84e   :  { %947 = vmatpush.msrb.mxu0 %v1798_v33  ;;  %967 = vmatpush.msrb.mxu1 %v1801_v34 }
 0x850   :  { %948 = vmatpush.msrb.mxu0 %v1804_v36  ;;  %968 = vmatpush.msrb.mxu1 %v1807_v37 }
 0x852   :  { %949 = vmatpush.msrb.mxu0 %v1810_v38  ;;  %969 = vmatpush.msrb.mxu1 %v1813_v39 }
 0x854   :  { %950 = vmatpush.msrb.mxu0 %v1816_v40  ;;  %970 = vmatpush.msrb.mxu1 %v1819_v41 }
 0x8b2   :  { %v770_v4 = vpop.f32.mrf.mxu0  ;;  %v790_v5 = vpop.f32.mrf.mxu1 }
 0x8b3   :  { %v793_v6 = vmul.f32 0.1, %v770_v4  ;;  %v794_v7 = vmul.f32 0.1, %v790_v5 }
 0x8b5   :  { %v795_v8 = vsub.f32 %v1930_v16, %v793_v6  ;;  %v796_v9 = vsub.f32 %v1932_v17, %v794_v7 }
 0x8b7   :  { %v1019_v10 = vclamps-f32 %v795_v8, 0.001  ;;  %v1020_v11 = vclamps-f32 %v796_v9, 0.001 }
 0x8b9   :  { %v801_v59 = vsub.f32 %v795_v8, %v1019_v10  ;;  %v802_v60 = vsub.f32 %v796_v9, %v1020_v11 }
 0x8bb   :  { %819 = vmatmul.f32.vlgmr.msra.gmra.mxu0 %v801_v59  ;;  %839 = vmatmul.f32.vlgmr.msra.gmra.mxu1 %v802_v60 }
 0x938   :  { %v820_v61 = vpop.f32.mrf.mxu0  ;;  %v840_v62 = vpop.f32.mrf.mxu1 }
 0x939   :  { %v841_v22 = vadd.f32 %v840_v62, %v820_v61 }
 0x93b   :  { %v843_v23 = vsub.f32 %v841_v22, %v1968_v21 }
 0x93d   :  { %860 = vmatmul.f32.vlgmr.msra.gmra.mxu2 %v843_v23  ;;  %880 = vmatmul.f32.vlgmr.msra.gmra.mxu3 %v843_v23 }
 0x9c0   :  { %v861_v24 = vpop.f32.mrf.mxu2  ;;  %v881_v25 = vpop.f32.mrf.mxu3 }
 0x9c1   :  { %v884_v26 = vmul.f32 0.1, %v861_v24  ;;  %v885_v27 = vmul.f32 0.1, %v881_v25 }
 0x9c3   :  { %v886_v28 = vsub.f32 %v801_v59, %v884_v26  ;;  %v887_v29 = vsub.f32 %v802_v60, %v885_v27 }
 0x9c5   :  { %v1021_v30 = vclamps-f32 %v886_v28, 0.001  ;;  %v1022_v31 = vclamps-f32 %v887_v29, 0.001 }
 0x9c7   :  { %v892_v63 = vsub.f32 %v886_v28, %v1021_v30  ;;  %v893_v32 = vsub.f32 %v887_v29, %v1022_v31 }
 0x9c9   :  { %910 = vmatmul.f32.vlgmr.msrb.gmra.mxu2 %v892_v63  ;;  %930 = vmatmul.f32.vlgmr.msrb.gmra.mxu3 %v893_v32 }
 0xa4c   :  { %v911_v33 = vpop.f32.mrf.mxu2  ;;  %v931_v34 = vpop.f32.mrf.mxu3 }
 0xa4d   :  { %v932_v36 = vadd.f32 %v931_v34, %v911_v33 }
 0xa4f   :  { %v934_v37 = vsub.f32 %v932_v36, %v1968_v21 }
 0xa51   :  { %951 = vmatmul.f32.vlgmr.msrb.gmra.mxu0 %v934_v37  ;;  %971 = vmatmul.f32.vlgmr.msrb.gmra.mxu1 %v934_v37 }
 0xace   :  { %v952_v38 = vpop.f32.mrf.mxu0  ;;  %v972_v39 = vpop.f32.mrf.mxu1 }
 0xacf   :  { %v975_v40 = vmul.f32 0.1, %v952_v38  ;;  %v976_v41 = vmul.f32 0.1, %v972_v39 }
 0xad1   :  { %v977_v43 = vsub.f32 %v892_v63, %v975_v40  ;;  %v978_v44 = vsub.f32 %v893_v32, %v976_v41 }
 0xad3   :  { %v1023_v45 = vclamps-f32 %v977_v43, 0.001  ;;  %v1024_v46 = vclamps-f32 %v978_v44, 0.001 }
 0xad5   :  { %v983_v47 = vsub.f32 %v977_v43, %v1023_v45  ;;  %v984_v48 = vsub.f32 %v978_v44, %v1024_v46 }
 0xad7   :  { %985 = vst [vmem:[#allocation7] sm:$0xff] %v983_v47 }
 0xad8   :  { %986 = vst [vmem:[#allocation7 + $0x8] sm:$0xff] %v984_v48 }
 0xad9   :  { %997 = dma.vmem_to_hbm [thread:$0]  %s993_s1, 256, %s995_s23, [#allocation4]  }
 0xada   :  { %1140 = dma.done.wait [#allocation4], 256  }
 0xadb   :  { %1141 = vsyncadd [#allocation4], 4294967040 }
 0xadc   :  { %1002 = vsyncpa [#allocation3], 1 }
 0xadd   :  { %1003 = vsyncpa [#allocation6], 1 }
 0xade   :  { %1004 = vsyncpa [#allocation4], 1 }

</bundles_post_ra>
